<compile_context>
chip_gen: v5e
topology: v5e:2x2
jax: 0.10.0
libtpu: 0.0.40
codegen_flags: <defaults>
</compile_context>

<pallas_src>
import math
import functools

import jax
import jax.numpy as jnp
from jax.experimental import pallas as pl
from jax.experimental.pallas import tpu as pltpu


# ----------------------------------------------------------------------------- geometry


def _level_geometry(H, W, level):
    h_k = int(math.ceil(H / level))
    w_k = int(math.ceil(W / level))
    w_pad1 = int(math.floor((w_k * level - W) / 2))
    w_pad2 = int(math.ceil((w_k * level - W) / 2))
    h_pad1 = int(math.floor((h_k * level - H) / 2))
    h_pad2 = int(math.ceil((h_k * level - H) / 2))
    return h_k, w_k, h_pad1, h_pad2, w_pad1, w_pad2


# ----------------------------------------------------------------------------- kernel


def _spp_kernel(x_ref, o_ref, *, levels, mode):
    """x_ref block: (1, H, W, c_blk) channels-last.  o_ref block: (1, S_total, c_blk)."""
    _, H, W, c_blk = x_ref.shape
    o_dtype = o_ref.dtype

    cells = []  # S_total entries of shape (1, c_blk), in (level, row, col) order

    for level in levels:
        h_k, w_k, h_p1, _, w_p1, _ = _level_geometry(H, W, level)
        area = h_k * w_k
        inv_area = 1.0 / float(area)

        # -- stage 1: reduce along W (sublane axis) per column group, full height.
        #    L wide reductions -> (H, c_blk) intermediates (separable pooling).
        col_red, col_valid = [], []
        for j in range(level):
            cs = max(j * w_k - w_p1, 0)
            ce = min((j + 1) * w_k - w_p1, W)
            width = max(ce - cs, 0)
            col_valid.append(width)
            if width == 0:                       # column group entirely in the padding
                col_red.append(None)
                continue
            win = x_ref[0, :, cs:ce, :]          # (H, width, c_blk), sliced from VMEM ref
            if mode == 'max':
                col_red.append(jnp.max(win, axis=1))                      # (H, c_blk)
            else:                                # 'avg': f32 accumulation
                col_red.append(jnp.sum(win.astype(jnp.float32), axis=1))  # (H, c_blk)

        # -- stage 2: reduce the (H, c_blk) intermediates along H per row group.
        for i in range(level):
            rs = max(i * h_k - h_p1, 0)
            re = min((i + 1) * h_k - h_p1, H)
            height = max(re - rs, 0)
            for j in range(level):
                n_valid = height * col_valid[j]
                if n_valid == 0:
                    # window lies entirely inside the zero padding
                    cells.append(jnp.zeros((1, c_blk), dtype=o_dtype))
                    continue
                rows = col_red[j][rs:re, :]                       # (height, c_blk)
                if mode == 'max':
                    cell = jnp.max(rows, axis=0, keepdims=True)   # (1, c_blk)
                    if n_valid < area:
                        # padded zeros take part in the max
                        cell = jnp.maximum(cell, jnp.zeros_like(cell))
                    cells.append(cell.astype(o_dtype))
                else:
                    # zeros contribute 0 to the sum; AvgPool divides by the full
                    # kernel size (padding applied via F.pad in the reference).
                    s = jnp.sum(rows, axis=0, keepdims=True)      # (1, c_blk) f32
                    cells.append((s * inv_area).astype(o_dtype))

    # one merged store / one output DMA per grid step
    o_ref[0] = jnp.concatenate(cells, axis=0)                     # (S_total, c_blk)


# ----------------------------------------------------------------------------- block sizing


def _sublane_multiple(dtype_bytes):
    # f32 -> 8 sublanes per tile, bf16 -> 16, int8/fp8 -> 32
    return max(8, 32 // int(dtype_bytes))


def _round_up(x, m):
    return ((x + m - 1) // m) * m


def _padded_block_bytes(outer, sublane, lane, dtype_bytes):
    """VMEM footprint of one block after (8,128) tile padding."""
    return (outer
            * _round_up(sublane, _sublane_multiple(dtype_bytes))
            * _round_up(lane, 128)
            * int(dtype_bytes))


# Target footprint for the double-buffered input + output blocks.  ~20 MiB keeps
# 2x(padded input) + 2x(padded output) comfortably inside v7x's 64 MiB/TC VMEM
# (32 MiB default scoped) and v5e/v6e limits while still amortizing the
# ~0.35 us per-grid-step overhead with large blocks.
_BLOCK_FOOTPRINT_BUDGET = 20 << 20


def _pick_c_block(B, C, H, W, S_total, dtype_bytes, budget=_BLOCK_FOOTPRINT_BUDGET):
    """Largest channel lane-block whose padded, double-buffered footprint fits."""
    # Valid lane blocks under the (8,128) rule: the full C, or a multiple of 128
    # that divides C.
    cands = sorted({C} | {c for c in range(128, C, 128) if C % c == 0}, reverse=True)

    def footprint(c):
        return 2 * (_padded_block_bytes(H, W, c, dtype_bytes)
                    + _padded_block_bytes(1, S_total, c, dtype_bytes))

    fitting = [c for c in cands if footprint(c) <= budget]
    pool = fitting if fitting else [cands[-1]]   # fall back to the smallest valid block

    # Keep at least 2 grid iterations when possible so v7x's second TensorCore
    # (both grid axes are "parallel") is not left idle.
    best = pool[0]
    if B * (C // best) < 2:
        for c in pool:
            if B * (C // c) >= 2:
                return c
    return best


# ----------------------------------------------------------------------------- wrapper


def pyramid_pooling(x_nchw, levels, mode='max'):
    """Pallas implementation of PyramidPooling.forward.  x_nchw: (B, C, H, W)."""
    levels = tuple(int(l) for l in levels)
    if mode not in ('max', 'avg'):
        raise RuntimeError('Unknown pooling type: %s, please use "max" or "avg".' % mode)

    B, C, H, W = x_nchw.shape
    dtype = x_nchw.dtype
    dtype_bytes = jnp.dtype(dtype).itemsize
    S_total = sum(L * L for L in levels)

    # One XLA transpose to channels-last so C sits on the 128-lane axis in-kernel.
    x_cl = jnp.transpose(x_nchw, (0, 2, 3, 1))          # (B, H, W, C)

    c_blk = _pick_c_block(B, C, H, W, S_total, dtype_bytes)
    assert C % c_blk == 0, (C, c_blk)
    grid = (B, C // c_blk)

    # Padding-aware explicit VMEM limit: double-buffered in+out blocks + headroom,
    # clamped to a level that is safe on every generation (v5e default scoped
    # limit is only 16 MiB, so we always pass it explicitly).
    needed = 2 * (_padded_block_bytes(H, W, c_blk, dtype_bytes)
                  + _padded_block_bytes(1, S_total, c_blk, dtype_bytes))
    vmem_limit = int(min(max(needed + (4 << 20), 16 << 20), 32 << 20))
    vmem_limit = max(vmem_limit, needed + (2 << 20))    # never below the actual need

    kernel = functools.partial(_spp_kernel, levels=levels, mode=mode)

    out = pl.pallas_call(
        kernel,
        out_shape=jax.ShapeDtypeStruct((B, S_total, C), dtype),
        grid_spec=pltpu.PrefetchScalarGridSpec(
            num_scalar_prefetch=0,
            grid=grid,
            # default 2-deep double-buffering kept (read-once streaming kernel)
            in_specs=[pl.BlockSpec((1, H, W, c_blk), lambda b, c: (b, 0, 0, c))],
            out_specs=pl.BlockSpec((1, S_total, c_blk), lambda b, c: (b, 0, c)),
        ),
        compiler_params=pltpu.CompilerParams(
            dimension_semantics=("parallel", "parallel"),
            vmem_limit_bytes=vmem_limit),
    )(x_cl)

    # Tiny glue on the pooled tensor only: per level (B, L*L, C) -> (B, C, L*L)
    # -> (B, C*L*L), then concat over levels.  This reproduces PyTorch's
    # x.view(B, -1) flatten order (channel-major, then row, then column).
    flats, off = [], 0
    for L in levels:
        sl = out[:, off:off + L * L, :]
        flats.append(jnp.transpose(sl, (0, 2, 1)).reshape(B, C * L * L))
        off += L * L
    return jnp.concatenate(flats, axis=1)


# ----------------------------------------------------------------------------- reference


def spp_reference(x, levels, mode):
    """Pure-JAX reference mirroring the PyTorch static method (pad + pool)."""
    B, C, H, W = x.shape
    outs = []
    for L in levels:
        h_k, w_k, h_p1, h_p2, w_p1, w_p2 = _level_geometry(H, W, L)
        xp = jnp.pad(x, ((0, 0), (0, 0), (h_p1, h_p2), (w_p1, w_p2)))
        xr = xp.reshape(B, C, L, h_k, L, w_k)
        if mode == 'max':
            p = xr.max(axis=(3, 5))
        else:
            p = xr.mean(axis=(3, 5))
        outs.append(p.reshape(B, -1))
    return jnp.concatenate(outs, axis=1)


if __name__ == "__main__":
    # PyramidPooling has no learnable parameters; only `levels` and `mode`.
    levels = (1, 2, 3)      # level 3 exercises the zero-padding path (16 % 3 != 0)

    key = jax.random.PRNGKey(0)
    x = jax.random.normal(key, (2, 4, 16, 16), dtype=jnp.float32)  # NCHW

    expected_n = sum(4 * L * L for L in levels)   # C * L * L per level

    for mode in ('max', 'avg'):
        out = jax.block_until_ready(pyramid_pooling(x, levels, mode))
        assert out.shape == (2, expected_n), out.shape

        ref = spp_reference(x, levels, mode)
        assert jnp.allclose(out, ref, atol=1e-5, rtol=1e-5), (
            mode, float(jnp.max(jnp.abs(out - ref)))
        )

    print("KERNEL_OK")
</pallas_src>

<mosaic_0001>
module attributes {stable_mosaic.version = 11 : i64} {
  func.func @_spp_kernel(%arg0: i32, %arg1: i32, %arg2: memref<1x16x16x4xf32, #tpu.memory_space<vmem>>, %arg3: memref<1x14x4xf32, #tpu.memory_space<vmem>>) attributes {dimension_semantics = [#tpu.dimension_semantics<parallel>, #tpu.dimension_semantics<parallel>], iteration_bounds = array<i64: 2, 1>, scalar_prefetch = 0 : i64, scratch_operands = 0 : i64, tpu.core_type = #tpu.core_type<tc>, window_params = [{transform_indices = @transform_0, window_bounds = array<i64: 1, 16, 16, 4>}, {transform_indices = @transform_1, window_bounds = array<i64: 1, 14, 4>}]} {
    %c0 = arith.constant 0 : index
    %c0_0 = arith.constant 0 : index
    %c0_1 = arith.constant 0 : index
    %c0_2 = arith.constant 0 : index
    %0 = vector.load %arg2[%c0, %c0_0, %c0_1, %c0_2] : memref<1x16x16x4xf32, #tpu.memory_space<vmem>>, vector<1x16x16x4xf32>
    %1 = vector.shape_cast %0 : vector<1x16x16x4xf32> to vector<16x16x4xf32>
    %cst = arith.constant dense<0xFF800000> : vector<16x4xf32>
    %2 = vector.multi_reduction <maximumf>, %1, %cst [1] : vector<16x16x4xf32> to vector<16x4xf32>
    %cst_3 = arith.constant dense<0xFF800000> : vector<4xf32>
    %3 = vector.multi_reduction <maximumf>, %2, %cst_3 [0] : vector<16x4xf32> to vector<4xf32>
    %4 = vector.shape_cast %3 : vector<4xf32> to vector<1x4xf32>
    %c0_4 = arith.constant 0 : index
    %c0_5 = arith.constant 0 : index
    %c0_6 = arith.constant 0 : index
    %c0_7 = arith.constant 0 : index
    %5 = vector.load %arg2[%c0_4, %c0_5, %c0_6, %c0_7] : memref<1x16x16x4xf32, #tpu.memory_space<vmem>>, vector<1x16x8x4xf32>
    %6 = vector.shape_cast %5 : vector<1x16x8x4xf32> to vector<16x8x4xf32>
    %cst_8 = arith.constant dense<0xFF800000> : vector<16x4xf32>
    %7 = vector.multi_reduction <maximumf>, %6, %cst_8 [1] : vector<16x8x4xf32> to vector<16x4xf32>
    %c0_9 = arith.constant 0 : index
    %c0_10 = arith.constant 0 : index
    %c8 = arith.constant 8 : index
    %c0_11 = arith.constant 0 : index
    %8 = vector.load %arg2[%c0_9, %c0_10, %c8, %c0_11] : memref<1x16x16x4xf32, #tpu.memory_space<vmem>>, vector<1x16x8x4xf32>
    %9 = vector.shape_cast %8 : vector<1x16x8x4xf32> to vector<16x8x4xf32>
    %cst_12 = arith.constant dense<0xFF800000> : vector<16x4xf32>
    %10 = vector.multi_reduction <maximumf>, %9, %cst_12 [1] : vector<16x8x4xf32> to vector<16x4xf32>
    %11 = vector.extract_strided_slice %7 {offsets = [0, 0], sizes = [8, 4], strides = [1, 1]} : vector<16x4xf32> to vector<8x4xf32>
    %cst_13 = arith.constant dense<0xFF800000> : vector<4xf32>
    %12 = vector.multi_reduction <maximumf>, %11, %cst_13 [0] : vector<8x4xf32> to vector<4xf32>
    %13 = vector.shape_cast %12 : vector<4xf32> to vector<1x4xf32>
    %14 = vector.extract_strided_slice %10 {offsets = [0, 0], sizes = [8, 4], strides = [1, 1]} : vector<16x4xf32> to vector<8x4xf32>
    %cst_14 = arith.constant dense<0xFF800000> : vector<4xf32>
    %15 = vector.multi_reduction <maximumf>, %14, %cst_14 [0] : vector<8x4xf32> to vector<4xf32>
    %16 = vector.shape_cast %15 : vector<4xf32> to vector<1x4xf32>
    %17 = vector.extract_strided_slice %7 {offsets = [8, 0], sizes = [8, 4], strides = [1, 1]} : vector<16x4xf32> to vector<8x4xf32>
    %cst_15 = arith.constant dense<0xFF800000> : vector<4xf32>
    %18 = vector.multi_reduction <maximumf>, %17, %cst_15 [0] : vector<8x4xf32> to vector<4xf32>
    %19 = vector.shape_cast %18 : vector<4xf32> to vector<1x4xf32>
    %20 = vector.extract_strided_slice %10 {offsets = [8, 0], sizes = [8, 4], strides = [1, 1]} : vector<16x4xf32> to vector<8x4xf32>
    %cst_16 = arith.constant dense<0xFF800000> : vector<4xf32>
    %21 = vector.multi_reduction <maximumf>, %20, %cst_16 [0] : vector<8x4xf32> to vector<4xf32>
    %22 = vector.shape_cast %21 : vector<4xf32> to vector<1x4xf32>
    %c0_17 = arith.constant 0 : index
    %c0_18 = arith.constant 0 : index
    %c0_19 = arith.constant 0 : index
    %c0_20 = arith.constant 0 : index
    %23 = vector.load %arg2[%c0_17, %c0_18, %c0_19, %c0_20] : memref<1x16x16x4xf32, #tpu.memory_space<vmem>>, vector<1x16x5x4xf32>
    %24 = vector.shape_cast %23 : vector<1x16x5x4xf32> to vector<16x5x4xf32>
    %cst_21 = arith.constant dense<0xFF800000> : vector<16x4xf32>
    %25 = vector.multi_reduction <maximumf>, %24, %cst_21 [1] : vector<16x5x4xf32> to vector<16x4xf32>
    %c0_22 = arith.constant 0 : index
    %c0_23 = arith.constant 0 : index
    %c5 = arith.constant 5 : index
    %c0_24 = arith.constant 0 : index
    %26 = vector.load %arg2[%c0_22, %c0_23, %c5, %c0_24] : memref<1x16x16x4xf32, #tpu.memory_space<vmem>>, vector<1x16x6x4xf32>
    %27 = vector.shape_cast %26 : vector<1x16x6x4xf32> to vector<16x6x4xf32>
    %cst_25 = arith.constant dense<0xFF800000> : vector<16x4xf32>
    %28 = vector.multi_reduction <maximumf>, %27, %cst_25 [1] : vector<16x6x4xf32> to vector<16x4xf32>
    %c0_26 = arith.constant 0 : index
    %c0_27 = arith.constant 0 : index
    %c11 = arith.constant 11 : index
    %c0_28 = arith.constant 0 : index
    %29 = vector.load %arg2[%c0_26, %c0_27, %c11, %c0_28] : memref<1x16x16x4xf32, #tpu.memory_space<vmem>>, vector<1x16x5x4xf32>
    %30 = vector.shape_cast %29 : vector<1x16x5x4xf32> to vector<16x5x4xf32>
    %cst_29 = arith.constant dense<0xFF800000> : vector<16x4xf32>
    %31 = vector.multi_reduction <maximumf>, %30, %cst_29 [1] : vector<16x5x4xf32> to vector<16x4xf32>
    %32 = vector.extract_strided_slice %25 {offsets = [0, 0], sizes = [5, 4], strides = [1, 1]} : vector<16x4xf32> to vector<5x4xf32>
    %cst_30 = arith.constant dense<0xFF800000> : vector<4xf32>
    %33 = vector.multi_reduction <maximumf>, %32, %cst_30 [0] : vector<5x4xf32> to vector<4xf32>
    %34 = vector.shape_cast %33 : vector<4xf32> to vector<1x4xf32>
    %cst_31 = arith.constant 0.000000e+00 : f32
    %35 = vector.broadcast %cst_31 : f32 to vector<1x4xf32>
    %36 = arith.maximumf %34, %35 : vector<1x4xf32>
    %37 = vector.extract_strided_slice %28 {offsets = [0, 0], sizes = [5, 4], strides = [1, 1]} : vector<16x4xf32> to vector<5x4xf32>
    %cst_32 = arith.constant dense<0xFF800000> : vector<4xf32>
    %38 = vector.multi_reduction <maximumf>, %37, %cst_32 [0] : vector<5x4xf32> to vector<4xf32>
    %39 = vector.shape_cast %38 : vector<4xf32> to vector<1x4xf32>
    %cst_33 = arith.constant 0.000000e+00 : f32
    %40 = vector.broadcast %cst_33 : f32 to vector<1x4xf32>
    %41 = arith.maximumf %39, %40 : vector<1x4xf32>
    %42 = vector.extract_strided_slice %31 {offsets = [0, 0], sizes = [5, 4], strides = [1, 1]} : vector<16x4xf32> to vector<5x4xf32>
    %cst_34 = arith.constant dense<0xFF800000> : vector<4xf32>
    %43 = vector.multi_reduction <maximumf>, %42, %cst_34 [0] : vector<5x4xf32> to vector<4xf32>
    %44 = vector.shape_cast %43 : vector<4xf32> to vector<1x4xf32>
    %cst_35 = arith.constant 0.000000e+00 : f32
    %45 = vector.broadcast %cst_35 : f32 to vector<1x4xf32>
    %46 = arith.maximumf %44, %45 : vector<1x4xf32>
    %47 = vector.extract_strided_slice %25 {offsets = [5, 0], sizes = [6, 4], strides = [1, 1]} : vector<16x4xf32> to vector<6x4xf32>
    %cst_36 = arith.constant dense<0xFF800000> : vector<4xf32>
    %48 = vector.multi_reduction <maximumf>, %47, %cst_36 [0] : vector<6x4xf32> to vector<4xf32>
    %49 = vector.shape_cast %48 : vector<4xf32> to vector<1x4xf32>
    %cst_37 = arith.constant 0.000000e+00 : f32
    %50 = vector.broadcast %cst_37 : f32 to vector<1x4xf32>
    %51 = arith.maximumf %49, %50 : vector<1x4xf32>
    %52 = vector.extract_strided_slice %28 {offsets = [5, 0], sizes = [6, 4], strides = [1, 1]} : vector<16x4xf32> to vector<6x4xf32>
    %cst_38 = arith.constant dense<0xFF800000> : vector<4xf32>
    %53 = vector.multi_reduction <maximumf>, %52, %cst_38 [0] : vector<6x4xf32> to vector<4xf32>
    %54 = vector.shape_cast %53 : vector<4xf32> to vector<1x4xf32>
    %55 = vector.extract_strided_slice %31 {offsets = [5, 0], sizes = [6, 4], strides = [1, 1]} : vector<16x4xf32> to vector<6x4xf32>
    %cst_39 = arith.constant dense<0xFF800000> : vector<4xf32>
    %56 = vector.multi_reduction <maximumf>, %55, %cst_39 [0] : vector<6x4xf32> to vector<4xf32>
    %57 = vector.shape_cast %56 : vector<4xf32> to vector<1x4xf32>
    %cst_40 = arith.constant 0.000000e+00 : f32
    %58 = vector.broadcast %cst_40 : f32 to vector<1x4xf32>
    %59 = arith.maximumf %57, %58 : vector<1x4xf32>
    %60 = vector.extract_strided_slice %25 {offsets = [11, 0], sizes = [5, 4], strides = [1, 1]} : vector<16x4xf32> to vector<5x4xf32>
    %cst_41 = arith.constant dense<0xFF800000> : vector<4xf32>
    %61 = vector.multi_reduction <maximumf>, %60, %cst_41 [0] : vector<5x4xf32> to vector<4xf32>
    %62 = vector.shape_cast %61 : vector<4xf32> to vector<1x4xf32>
    %cst_42 = arith.constant 0.000000e+00 : f32
    %63 = vector.broadcast %cst_42 : f32 to vector<1x4xf32>
    %64 = arith.maximumf %62, %63 : vector<1x4xf32>
    %65 = vector.extract_strided_slice %28 {offsets = [11, 0], sizes = [5, 4], strides = [1, 1]} : vector<16x4xf32> to vector<5x4xf32>
    %cst_43 = arith.constant dense<0xFF800000> : vector<4xf32>
    %66 = vector.multi_reduction <maximumf>, %65, %cst_43 [0] : vector<5x4xf32> to vector<4xf32>
    %67 = vector.shape_cast %66 : vector<4xf32> to vector<1x4xf32>
    %cst_44 = arith.constant 0.000000e+00 : f32
    %68 = vector.broadcast %cst_44 : f32 to vector<1x4xf32>
    %69 = arith.maximumf %67, %68 : vector<1x4xf32>
    %70 = vector.extract_strided_slice %31 {offsets = [11, 0], sizes = [5, 4], strides = [1, 1]} : vector<16x4xf32> to vector<5x4xf32>
    %cst_45 = arith.constant dense<0xFF800000> : vector<4xf32>
    %71 = vector.multi_reduction <maximumf>, %70, %cst_45 [0] : vector<5x4xf32> to vector<4xf32>
    %72 = vector.shape_cast %71 : vector<4xf32> to vector<1x4xf32>
    %cst_46 = arith.constant 0.000000e+00 : f32
    %73 = vector.broadcast %cst_46 : f32 to vector<1x4xf32>
    %74 = arith.maximumf %72, %73 : vector<1x4xf32>
    %75 = tpu.concatenate %4, %13, %16, %19, %22, %36, %41, %46, %51, %54, %59, %64, %69, %74 in 0 : vector<1x4xf32>, vector<1x4xf32>, vector<1x4xf32>, vector<1x4xf32>, vector<1x4xf32>, vector<1x4xf32>, vector<1x4xf32>, vector<1x4xf32>, vector<1x4xf32>, vector<1x4xf32>, vector<1x4xf32>, vector<1x4xf32>, vector<1x4xf32>, vector<1x4xf32> -> vector<14x4xf32>
    %c0_47 = arith.constant 0 : index
    %c0_48 = arith.constant 0 : index
    %c0_49 = arith.constant 0 : index
    %76 = vector.load %arg3[%c0_47, %c0_48, %c0_49] : memref<1x14x4xf32, #tpu.memory_space<vmem>>, vector<1x14x4xf32>
    %77 = vector.shape_cast %76 : vector<1x14x4xf32> to vector<14x4xf32>
    %78 = vector.shape_cast %75 : vector<14x4xf32> to vector<1x14x4xf32>
    tpu.vector_store %arg3[%c0_47, %c0_48, %c0_49], %78 {strides = array<i32>} : memref<1x14x4xf32, #tpu.memory_space<vmem>>, vector<1x14x4xf32>,
    return
  }
  func.func @transform_0(%arg0: i32, %arg1: i32) -> (i32, i32, i32, i32) {
    %c0_i32 = arith.constant 0 : i32
    %c0_i32_0 = arith.constant 0 : i32
    %c0_i32_1 = arith.constant 0 : i32
    return %arg0, %c0_i32, %c0_i32_0, %arg1 : i32, i32, i32, i32
  }
  func.func @transform_1(%arg0: i32, %arg1: i32) -> (i32, i32, i32) {
    %c0_i32 = arith.constant 0 : i32
    %c0_i32_0 = arith.constant 0 : i32
    return %arg0, %c0_i32, %arg1 : i32, i32, i32
  }
}

</mosaic_0001>

<bundles_post_ra>
// kernel: tpu_custom_call.1
= control target key start
LH: loop header
LB: loop body
LE: loop exit
PB: predicated region body
PF: predicated region fallthrough
CT: control target
= control target key end

     0   :  { %s1264_s6 = smov 0   ;;  %s1266_s7 = smov 0   ;;  %s2023_s0 = inlined_call_operand.vmem [shape: f32[2,16,16,4], index: 0, kind: input, shape index: {}]   ;;  %s2024_s1 = inlined_call_operand.vmem [shape: f32[2,14,4], index: 1, kind: output, shape index: {}]  }
   0x1   :  { %s1268_s8 = smov 0  }
   0x2 LB: > { %s23_s9 = sadd.s32 1, %s1248_s7  ;;  %p1197_p0 = scmp.ge.s32.totalorder %s1252_s8, 1  ;;  %s1252_s8 = sphi %s1268_s8, %s11_s8   ;;  %s1248_s7 = sphi %s1266_s7, %s2087_s7   ;;  %s1244_s6 = sphi %s1264_s6, %s2086_s6  }
   0x3   : > { %p25_p1 = scmp.ge.s32.totalorder %s23_s9, 2  ;;  %p106_p2 = scmp.lt.s32.totalorder %s1252_s8, 3 }
   0x5   : > { %s2089_s9 = smov (%p25_p1, %s23_s9), 0  ;;  %p107_p3 = pnand %p1197_p0, %p106_p2 }
   0x7   : > { %110 = sbr.rel (%p107_p3) target bundleno = 240 (0xf0), region = 24 }
   0xc   : > { %p132_p4 = scmp.lt.s32.totalorder %s1244_s6, 1  ;;  %vm180_vm0 = vcmask 31744   ;;  %vm624_vm1 = vcmask 28672   ;;  %vm753_vm2 = vcmask 29696   ;;  %vm1089_vm3 = vcmask 1040384  }
   0xd   : > { %vm1091_vm4 = vcmask 1041408   ;;  %vm1093_vm5 = vcmask 1042432   ;;  %vm1095_vm6 = vcmask 1043456   ;;  %vm1097_vm7 = vcmask 1044480  }
   0xe   : > { %s2091_s6 = smov (!%p132_p4, %s1244_s6), 1  ;;  %vm1099_vm8 = vcmask 1045504   ;;  %vm1101_vm9 = vcmask 1046528  }
   0xf   : > { %s1204_s10 = sshll.u32 %s2091_s6, 8  ;;  %s1205_s14 = sshll.u32 %s2091_s6, 4 }
  0x10   : > { %s1288_s13 = scalar_lea.vmem %s2023_s0, %s1204_s10  ;;  %s147_s17 = scalar_lea.vmem %s2024_s1, %s1205_s14 }
  0x11   : > { %v148_v0 = vld [vmem:[%s1288_s13] sm:$0xff]  ;;  %v149_v1 = vld [vmem:[%s1288_s13 + $0x8] sm:$0xff]  ;;  %v150_v2 = vld [vmem:[%s1288_s13 + $0x10] sm:$0xff] }
  0x12   : > { %v151_v3 = vld [vmem:[%s1288_s13 + $0x18] sm:$0xff]  ;;  %v152_v4 = vld [vmem:[%s1288_s13 + $0x20] sm:$0xff]  ;;  %v153_v5 = vld [vmem:[%s1288_s13 + $0x28] sm:$0xff]  ;;  %v1297_v6 = vsel %vm180_vm0, %v148_v0, -inf  ;;  %v1300_v7 = vsel %vm180_vm0, %v149_v1, -inf  ;;  %v1303_v8 = vsel %vm180_vm0, %v150_v2, -inf }
  0x13   : > { %v154_v9 = vld [vmem:[%s1288_s13 + $0x30] sm:$0xff]  ;;  %v155_v10 = vld [vmem:[%s1288_s13 + $0x38] sm:$0xff]  ;;  %v156_v11 = vld [vmem:[%s1288_s13 + $0x40] sm:$0xff]  ;;  %v183_v12 = vmax.f32 %v1297_v6, %v1300_v7  ;;  %v1311_v13 = vsel %vm180_vm0, %v151_v3, -inf  ;;  %v1314_v14 = vsel %vm180_vm0, %v152_v4, -inf  ;;  %v1317_v15 = vsel %vm180_vm0, %v153_v5, -inf }
  0x14   : > { %v157_v16 = vld [vmem:[%s1288_s13 + $0x48] sm:$0xff]  ;;  %v158_v17 = vld [vmem:[%s1288_s13 + $0x50] sm:$0xff]  ;;  %v159_v18 = vld [vmem:[%s1288_s13 + $0x58] sm:$0xff]  ;;  %v192_v19 = vmax.f32 %v1303_v8, %v1311_v13  ;;  %v201_v20 = vmax.f32 %v1314_v14, %v1317_v15  ;;  %v1327_v21 = vsel %vm180_vm0, %v154_v9, -inf  ;;  %v1330_v22 = vsel %vm180_vm0, %v155_v10, -inf }
  0x15   : > { %v160_v23 = vld [vmem:[%s1288_s13 + $0x60] sm:$0xff]  ;;  %v184_v24 = vrot.slane %v183_v12, 4  ;;  %v210_v25 = vmax.f32 %v1327_v21, %v1330_v22  ;;  %v1336_v26 = vsel %vm180_vm0, %v156_v11, -inf  ;;  %v1339_v27 = vsel %vm180_vm0, %v157_v16, -inf  ;;  %v161_v28 = vld [vmem:[%s1288_s13 + $0x68] sm:$0xff]  ;;  %v162_v29 = vld [vmem:[%s1288_s13 + $0x70] sm:$0xff] }
  0x16   : > { %v193_v30 = vrot.slane %v192_v19, 4  ;;  %v202_v31 = vrot.slane %v201_v20, 4  ;;  %v219_v32 = vmax.f32 %v1336_v26, %v1339_v27  ;;  %v1346_v33 = vsel %vm180_vm0, %v158_v17, -inf  ;;  %v163_v38 = vld [vmem:[%s1288_s13 + $0x78] sm:$0xff]  ;;  %v164_v63 = vld [vmem:[%s1288_s13 + $0x80] sm:$0xff]  ;;  %v165_v4 = vld [vmem:[%s1288_s13 + $0x88] sm:$0xff] }
  0x17   : > { %v185_v34 = vmax.f32 %v183_v12, %v184_v24  ;;  %v211_v35 = vrot.slane %v210_v25, 4  ;;  %v1349_v36 = vsel %vm180_vm0, %v159_v18, -inf  ;;  %v1352_v37 = vsel %vm180_vm0, %v160_v23, -inf  ;;  %v166_v5 = vld [vmem:[%s1288_s13 + $0x90] sm:$0xff]  ;;  %v167_v16 = vld [vmem:[%s1288_s13 + $0x98] sm:$0xff]  ;;  %v168_v23 = vld [vmem:[%s1288_s13 + $0xa0] sm:$0xff] }
  0x18   : > { %v194_v39 = vmax.f32 %v192_v19, %v193_v30  ;;  %v203_v40 = vmax.f32 %v201_v20, %v202_v31  ;;  %v220_v41 = vrot.slane %v219_v32, 4  ;;  %v228_v42 = vmax.f32 %v1346_v33, %v1349_v36  ;;  %v169_v24 = vld [vmem:[%s1288_s13 + $0xa8] sm:$0xff] }
  0x19   : > { %v186_v43 = vrot.slane %v185_v34, 2  ;;  %v212_v44 = vmax.f32 %v210_v25, %v211_v35  ;;  %v1358_v45 = vsel %vm180_vm0, %v161_v28, -inf  ;;  %v1361_v46 = vsel %vm180_vm0, %v162_v29, -inf }
  0x1a   : > { %v195_v47 = vrot.slane %v194_v39, 2  ;;  %v204_v48 = vrot.slane %v203_v40, 2  ;;  %v221_v49 = vmax.f32 %v219_v32, %v220_v41  ;;  %v229_v50 = vrot.slane %v228_v42, 4 }
  0x1b   : > { %v187_v51 = vmax.f32 %v185_v34, %v186_v43  ;;  %v213_v52 = vrot.slane %v212_v44, 2  ;;  %v237_v53 = vmax.f32 %v1352_v37, %v1358_v45  ;;  %v1366_v54 = vsel %vm180_vm0, %v163_v38, -inf  ;;  %v170_v38 = vld [vmem:[%s1288_s13 + $0xb0] sm:$0xff] }
  0x1c   : > { %v196_v55 = vmax.f32 %v194_v39, %v195_v47  ;;  %v205_v56 = vmax.f32 %v203_v40, %v204_v48  ;;  %v222_v57 = vrot.slane %v221_v49, 2  ;;  %v230_v58 = vmax.f32 %v228_v42, %v229_v50  ;;  %v171_v39 = vld [vmem:[%s1288_s13 + $0xb8] sm:$0xff]  ;;  %v172_v40 = vld [vmem:[%s1288_s13 + $0xc0] sm:$0xff] }
  0x1d   : > { %v188_v59 = vrot.slane %v187_v51, 1  ;;  %v214_v60 = vmax.f32 %v212_v44, %v213_v52  ;;  %v238_v61 = vrot.slane %v237_v53, 4  ;;  %v246_v62 = vmax.f32 %v1361_v46, %v1366_v54  ;;  %v174_v52 = vld [vmem:[%s1288_s13 + $0xd0] sm:$0xff] }
  0x1e   : > { %v197_v0 = vrot.slane %v196_v55, 1  ;;  %v206_v1 = vrot.slane %v205_v56, 1  ;;  %v223_v2 = vmax.f32 %v221_v49, %v222_v57  ;;  %v231_v3 = vrot.slane %v230_v58, 2 }
  0x1f   : > { %v1373_v9 = vmax.f32 %v187_v51, %v188_v59  ;;  %v215_v10 = vrot.slane %v214_v60, 1  ;;  %v239_v11 = vmax.f32 %v237_v53, %v238_v61  ;;  %v247_v12 = vrot.slane %v246_v62, 4  ;;  %v173_v51 = vld [vmem:[%s1288_s13 + $0xc8] sm:$0xff] }
  0x20   : > { %v1376_v17 = vmax.f32 %v196_v55, %v197_v0  ;;  %v1378_v18 = vmax.f32 %v205_v56, %v206_v1  ;;  %v224_v19 = vrot.slane %v223_v2, 1  ;;  %v232_v20 = vmax.f32 %v230_v58, %v231_v3 }
  0x21   : > { %v1382_v25 = vmax.f32 %v214_v60, %v215_v10  ;;  %v240_v28 = vrot.slane %v239_v11, 2  ;;  %v248_v29 = vmax.f32 %v246_v62, %v247_v12  ;;  %v1385_v30 = vsel %vm180_vm0, %v164_v63, -inf  ;;  %v175_v62 = vld [vmem:[%s1288_s13 + $0xd8] sm:$0xff]  ;;  %v176_v63 = vld [vmem:[%s1288_s13 + $0xe0] sm:$0xff]  ;;  %v177_v12 = vld [vmem:[%s1288_s13 + $0xe8] sm:$0xff] }
  0x22   : > { %v1387_v31 = vmax.f32 %v223_v2, %v224_v19  ;;  %v233_v32 = vrot.slane %v232_v20, 1  ;;  %v1390_v34 = vsel %vm180_vm0, %v165_v4, -inf  ;;  %v1393_v35 = vsel %vm180_vm0, %v166_v5, -inf }
  0x23   : > { %v241_v41 = vmax.f32 %v239_v11, %v240_v28  ;;  %v249_v42 = vrot.slane %v248_v29, 2  ;;  %v255_v43 = vmax.f32 %v1385_v30, %v1390_v34  ;;  %v1401_v44 = vsel %vm180_vm0, %v167_v16, -inf  ;;  %v178_v16 = vld [vmem:[%s1288_s13 + $0xf0] sm:$0xff] }
  0x24   : > { %v1403_v47 = vmax.f32 %v232_v20, %v233_v32  ;;  %v264_v48 = vmax.f32 %v1393_v35, %v1401_v44  ;;  %v1408_v49 = vsel %vm180_vm0, %v168_v23, -inf  ;;  %v1411_v50 = vsel %vm180_vm0, %v169_v24, -inf }
  0x25   : > { %v242_v53 = vrot.slane %v241_v41, 1  ;;  %v250_v55 = vmax.f32 %v248_v29, %v249_v42  ;;  %v256_v56 = vrot.slane %v255_v43, 4  ;;  %v273_v57 = vmax.f32 %v1408_v49, %v1411_v50 }
  0x26   : > { %v265_v58 = vrot.slane %v264_v48, 4  ;;  %v1418_v59 = vsel %vm180_vm0, %v170_v38, -inf  ;;  %v1421_v60 = vsel %vm180_vm0, %v171_v39, -inf  ;;  %v1424_v61 = vsel %vm180_vm0, %v172_v40, -inf  ;;  %v179_v39 = vld [vmem:[%s1288_s13 + $0xf8] sm:$0xff] }
  0x27   : > { %v1428_v0 = vmax.f32 %v241_v41, %v242_v53  ;;  %v251_v1 = vrot.slane %v250_v55, 1  ;;  %v257_v2 = vmax.f32 %v255_v43, %v256_v56  ;;  %v274_v3 = vrot.slane %v273_v57, 4 }
  0x28   : > { %v266_v4 = vmax.f32 %v264_v48, %v265_v58  ;;  %v282_v5 = vmax.f32 %v1418_v59, %v1421_v60  ;;  %v1433_v10 = vsel %vm180_vm0, %v173_v51, -inf  ;;  %v1436_v11 = vsel %vm180_vm0, %v174_v52, -inf }
  0x29   : > { %v252_v19 = vmax.f32 %v250_v55, %v251_v1  ;;  %v258_v20 = vrot.slane %v257_v2, 2  ;;  %v275_v23 = vmax.f32 %v273_v57, %v274_v3  ;;  %v291_v24 = vmax.f32 %v1424_v61, %v1433_v10 }
  0x2a   : > { %v267_v28 = vrot.slane %v266_v4, 2  ;;  %v283_v29 = vrot.slane %v282_v5, 4  ;;  %v1443_v32 = vsel %vm180_vm0, %v175_v62, -inf  ;;  %v1446_v38 = vsel %vm180_vm0, %v176_v63, -inf }
  0x2b   : > { %2039 = vst [vmem:[#allocation2_spill] sm:$0xff] %v1443_v32  ;;  %v259_v40 = vmax.f32 %v257_v2, %v258_v20  ;;  %v276_v41 = vrot.slane %v275_v23, 2  ;;  %v292_v42 = vrot.slane %v291_v24, 4  ;;  %v300_v43 = vmax.f32 %v1436_v11, %v1443_v32 }
  0x2c   : > { %v268_v48 = vmax.f32 %v266_v4, %v267_v28  ;;  %v284_v51 = vmax.f32 %v282_v5, %v283_v29  ;;  %v1452_v52 = vsel %vm180_vm0, %v177_v12, -inf  ;;  %v1455_v53 = vsel %vm180_vm0, %v178_v16, -inf }
  0x2d   : > { %2040 = vst [vmem:[#allocation3_spill] sm:$0xff] %v1452_v52  ;;  %v260_v55 = vrot.slane %v259_v40, 1  ;;  %v277_v56 = vmax.f32 %v275_v23, %v276_v41  ;;  %v293_v57 = vmax.f32 %v291_v24, %v292_v42  ;;  %v301_v58 = vrot.slane %v300_v43, 4 }
  0x2e   : > { %v269_v62 = vrot.slane %v268_v48, 1  ;;  %v285_v63 = vrot.slane %v284_v51, 2  ;;  %v309_v1 = vmax.f32 %v1446_v38, %v1452_v52  ;;  %v1460_v2 = vsel %vm180_vm0, %v179_v39, -inf }
  0x2f   : > { %v261_v3 = vmax.f32 %v259_v40, %v260_v55  ;;  %v278_v4 = vrot.slane %v277_v56, 1  ;;  %v294_v5 = vrot.slane %v293_v57, 2  ;;  %v302_v12 = vmax.f32 %v300_v43, %v301_v58 }
  0x30   : > { %v270_v20 = vmax.f32 %v268_v48, %v269_v62  ;;  %v286_v28 = vmax.f32 %v284_v51, %v285_v63  ;;  %v310_v16 = vrot.slane %v309_v1, 4  ;;  %v318_v23 = vmax.f32 %v1455_v53, %v1460_v2 }
  0x31   : > { %v279_v24 = vmax.f32 %v277_v56, %v278_v4  ;;  %v295_v29 = vmax.f32 %v293_v57, %v294_v5  ;;  %v303_v41 = vrot.slane %v302_v12, 2  ;;  %v325_v42 = vsel %vm180_vm0, %v1373_v9, -inf }
  0x32   : > { %v287_v52 = vrot.slane %v286_v28, 1  ;;  %v311_v32 = vmax.f32 %v309_v1, %v310_v16  ;;  %v319_v39 = vrot.slane %v318_v23, 4  ;;  %v326_v40 = vsel %vm180_vm0, %v1376_v17, -inf }
  0x33   : > { %v296_v55 = vrot.slane %v295_v29, 1  ;;  %v304_v43 = vmax.f32 %v302_v12, %v303_v41  ;;  %v327_v48 = vsel %vm180_vm0, %v1378_v18, -inf  ;;  %v328_v51 = vsel %vm180_vm0, %v1382_v25, -inf }
  0x34   : > { %v288_v56 = vmax.f32 %v286_v28, %v287_v52  ;;  %v312_v57 = vrot.slane %v311_v32, 2  ;;  %v320_v58 = vmax.f32 %v318_v23, %v319_v39  ;;  %v329_v9 = vsel %vm180_vm0, %v1387_v31, -inf }
  0x35   : > { %v297_v62 = vmax.f32 %v295_v29, %v296_v55  ;;  %v305_v63 = vrot.slane %v304_v43, 1  ;;  %v330_v1 = vmax.f32 %v325_v42, %v329_v9  ;;  %v331_v17 = vsel %vm180_vm0, %v1403_v47, -inf }
  0x36   : > { %v313_v4 = vmax.f32 %v311_v32, %v312_v57  ;;  %v321_v5 = vrot.slane %v320_v58, 2  ;;  %v332_v12 = vmax.f32 %v326_v40, %v331_v17  ;;  %v333_v18 = vsel %vm180_vm0, %v1428_v0, -inf }
  0x37   : > { %v306_v16 = vmax.f32 %v304_v43, %v305_v63  ;;  %v334_v25 = vmax.f32 %v327_v48, %v333_v18  ;;  %v335_v52 = vsel %vm180_vm0, %v252_v19, -inf  ;;  %v337_v28 = vsel %vm180_vm0, %v261_v3, -inf }
  0x38   : > { %v314_v23 = vrot.slane %v313_v4, 1  ;;  %v322_v31 = vmax.f32 %v320_v58, %v321_v5  ;;  %v336_v29 = vmax.f32 %v328_v51, %v335_v52  ;;  %v338_v41 = vmax.f32 %v330_v1, %v337_v28 }
  0x39   : > { %v339_v42 = vsel %vm180_vm0, %v270_v20, -inf  ;;  %v341_v47 = vsel %vm180_vm0, %v279_v24, -inf  ;;  %v343_v32 = vsel %vm180_vm0, %v288_v56, -inf  ;;  %v345_v39 = vsel %vm180_vm0, %v297_v62, -inf }
  0x3a   : > { %v315_v40 = vmax.f32 %v313_v4, %v314_v23  ;;  %v323_v0 = vrot.slane %v322_v31, 1  ;;  %v340_v55 = vmax.f32 %v332_v12, %v339_v42  ;;  %v342_v43 = vmax.f32 %v334_v25, %v341_v47 }
  0x3b   : > { %v344_v48 = vmax.f32 %v336_v29, %v343_v32  ;;  %v346_v19 = vmax.f32 %v338_v41, %v345_v39  ;;  %v347_v3 = vsel %vm180_vm0, %v306_v16, -inf  ;;  %v356_v57 = vrot.slane %v1297_v6, 4 }
  0x3c   : > { %v324_v51 = vmax.f32 %v322_v31, %v323_v0  ;;  %v348_v58 = vmax.f32 %v340_v55, %v347_v3  ;;  %v349_v20 = vsel %vm180_vm0, %v315_v40, -inf  ;;  %v362_v24 = vrot.slane %v1303_v8, 4 }
  0x3d   : > { %v350_v9 = vmax.f32 %v342_v43, %v349_v20  ;;  %v357_v56 = vmax.f32 %v1297_v6, %v356_v57  ;;  %v368_v62 = vrot.slane %v1314_v14, 4  ;;  %v374_v63 = vrot.slane %v1327_v21, 4 }
  0x3e   : > { %v351_v1 = vsel %vm180_vm0, %v324_v51, -inf  ;;  %v1492_v17 = vmax.f32 %v346_v19, %v348_v58  ;;  %v363_v4 = vmax.f32 %v1303_v8, %v362_v24  ;;  %v380_v5 = vrot.slane %v1336_v26, 4 }
  0x3f   : > { %v352_v12 = vmax.f32 %v344_v48, %v351_v1  ;;  %v358_v18 = vrot.slane %v357_v56, 2  ;;  %v369_v16 = vmax.f32 %v1314_v14, %v368_v62  ;;  %v375_v25 = vmax.f32 %v1327_v21, %v374_v63 }
  0x40   : > { %2041 = vst [vmem:[#allocation4_spill] sm:$0xff] %v1492_v17  ;;  %v364_v52 = vrot.slane %v363_v4, 2  ;;  %v381_v6 = vmax.f32 %v1336_v26, %v380_v5  ;;  %v386_v28 = vrot.slane %v1346_v33, 4  ;;  %v392_v23 = vrot.slane %v1352_v37, 4 }
  0x41   : > { %v1501_v31 = vmax.f32 %v350_v9, %v352_v12  ;;  %v359_v29 = vmax.f32 %v357_v56, %v358_v18  ;;  %v370_v41 = vrot.slane %v369_v16, 2  ;;  %v376_v8 = vrot.slane %v375_v25, 2 }
  0x42   : > { %v365_v42 = vmax.f32 %v363_v4, %v364_v52  ;;  %v382_v47 = vrot.slane %v381_v6, 2  ;;  %v387_v32 = vmax.f32 %v1346_v33, %v386_v28  ;;  %v393_v14 = vmax.f32 %v1352_v37, %v392_v23 }
  0x43   : > { %2042 = vst [vmem:[#allocation5_spill] sm:$0xff] %v1501_v31  ;;  %v360_v39 = vrot.slane %v359_v29, 1  ;;  %v371_v26 = vmax.f32 %v369_v16, %v370_v41  ;;  %v377_v40 = vmax.f32 %v375_v25, %v376_v8  ;;  %v398_v51 = vrot.slane %v1361_v46, 4 }
  0x44   : > { %v366_v0 = vrot.slane %v365_v42, 1  ;;  %v383_v55 = vmax.f32 %v381_v6, %v382_v47  ;;  %v388_v43 = vrot.slane %v387_v32, 2  ;;  %v394_v48 = vrot.slane %v393_v14, 2 }
  0x45   : > { %v1507_v19 = vmax.f32 %v359_v29, %v360_v39  ;;  %v372_v3 = vrot.slane %v371_v26, 1  ;;  %v378_v57 = vrot.slane %v377_v40, 1  ;;  %v399_v56 = vmax.f32 %v1361_v46, %v398_v51 }
  0x46   : > { %v1510_v58 = vmax.f32 %v365_v42, %v366_v0  ;;  %v384_v33 = vrot.slane %v383_v55, 1  ;;  %v389_v37 = vmax.f32 %v387_v32, %v388_v43  ;;  %v395_v20 = vmax.f32 %v393_v14, %v394_v48 }
  0x47   : > { %v1512_v24 = vmax.f32 %v371_v26, %v372_v3  ;;  %v1514_v9 = vmax.f32 %v377_v40, %v378_v57  ;;  %v404_v62 = vrot.slane %v1385_v30, 4  ;;  %v410_v5 = vrot.slane %v1393_v35, 4 }
  0x48   : > { %v1518_v63 = vmax.f32 %v383_v55, %v384_v33  ;;  %v390_v1 = vrot.slane %v389_v37, 1  ;;  %v396_v4 = vrot.slane %v395_v20, 1  ;;  %v400_v12 = vrot.slane %v399_v56, 2 }
  0x49   : > { %v405_v18 = vmax.f32 %v1385_v30, %v404_v62  ;;  %v416_v16 = vrot.slane %v1408_v49, 4  ;;  %v422_v25 = vrot.slane %v1418_v59, 4  ;;  %v411_v46 = vmax.f32 %v1393_v35, %v410_v5 }
  0x4a   : > { %v1524_v52 = vmax.f32 %v389_v37, %v390_v1  ;;  %v1526_v6 = vmax.f32 %v395_v20, %v396_v4  ;;  %v428_v28 = vrot.slane %v1424_v61, 4  ;;  %v401_v23 = vmax.f32 %v399_v56, %v400_v12 }
  0x4b   : > { %v406_v29 = vrot.slane %v405_v18, 2  ;;  %v417_v41 = vmax.f32 %v1408_v49, %v416_v16  ;;  %v423_v8 = vmax.f32 %v1418_v59, %v422_v25  ;;  %v412_v42 = vrot.slane %v411_v46, 2 }
  0x4c   : > { %v429_v30 = vmax.f32 %v1424_v61, %v428_v28  ;;  %v434_v47 = vrot.slane %v1436_v11, 4  ;;  %v440_v32 = vrot.slane %v1446_v38, 4  ;;  %v402_v14 = vrot.slane %v401_v23, 1 }
  0x4d   : > { %v407_v39 = vmax.f32 %v405_v18, %v406_v29  ;;  %v418_v26 = vrot.slane %v417_v41, 2  ;;  %v424_v40 = vrot.slane %v423_v8, 2  ;;  %v413_v35 = vmax.f32 %v411_v46, %v412_v42 }
  0x4e   : > { %v430_v0 = vrot.slane %v429_v30, 2  ;;  %v435_v55 = vmax.f32 %v1436_v11, %v434_v47  ;;  %v441_v43 = vmax.f32 %v1446_v38, %v440_v32  ;;  %v1537_v49 = vmax.f32 %v401_v23, %v402_v14 }
  0x4f   : > { %v408_v59 = vrot.slane %v407_v39, 1  ;;  %v419_v48 = vmax.f32 %v417_v41, %v418_v26  ;;  %v425_v3 = vmax.f32 %v423_v8, %v424_v40  ;;  %v414_v61 = vrot.slane %v413_v35, 1 }
  0x50   : > { %v431_v57 = vmax.f32 %v429_v30, %v430_v0  ;;  %v436_v51 = vrot.slane %v435_v55, 2  ;;  %v442_v33 = vrot.slane %v441_v43, 2  ;;  %v446_v62 = vrot.slane %v1455_v53, 4 }
  0x51   : > { %v1539_v37 = vmax.f32 %v407_v39, %v408_v59  ;;  %v420_v20 = vrot.slane %v419_v48, 1  ;;  %v426_v56 = vrot.slane %v425_v3, 1  ;;  %v1542_v1 = vmax.f32 %v413_v35, %v414_v61 }
  0x52   : > { %v432_v11 = vrot.slane %v431_v57, 1  ;;  %v437_v4 = vmax.f32 %v435_v55, %v436_v51  ;;  %v443_v38 = vmax.f32 %v441_v43, %v442_v33  ;;  %v447_v18 = vmax.f32 %v1455_v53, %v446_v62 }
  0x53   : > { %v1544_v5 = vmax.f32 %v419_v48, %v420_v20  ;;  %v1546_v12 = vmax.f32 %v425_v3, %v426_v56  ;;  %v452_v16 = vrot.slane %v1300_v7, 4  ;;  %v458_v23 = vrot.slane %v1311_v13, 4 }
  0x54   : > { %v1550_v25 = vmax.f32 %v431_v57, %v432_v11  ;;  %v438_v46 = vrot.slane %v437_v4, 1  ;;  %v444_v28 = vrot.slane %v443_v38, 1  ;;  %v448_v29 = vrot.slane %v447_v18, 2 }
  0x55   : > { %v453_v41 = vmax.f32 %v1300_v7, %v452_v16  ;;  %v464_v8 = vrot.slane %v1317_v15, 4  ;;  %v470_v42 = vrot.slane %v1330_v22, 4  ;;  %v459_v53 = vmax.f32 %v1311_v13, %v458_v23 }
  0x56   : > { %v1556_v30 = vmax.f32 %v437_v4, %v438_v46  ;;  %v1558_v47 = vmax.f32 %v443_v38, %v444_v28  ;;  %v476_v32 = vrot.slane %v1339_v27, 4  ;;  %v449_v14 = vmax.f32 %v447_v18, %v448_v29 }
  0x57   : > { %v454_v39 = vrot.slane %v453_v41, 2  ;;  %v465_v26 = vmax.f32 %v1317_v15, %v464_v8  ;;  %v471_v40 = vmax.f32 %v1330_v22, %v470_v42  ;;  %v460_v35 = vrot.slane %v459_v53, 2 }
  0x58   : > { %v477_v7 = vmax.f32 %v1339_v27, %v476_v32  ;;  %v482_v0 = vrot.slane %v1349_v36, 4  ;;  %v488_v55 = vrot.slane %v1358_v45, 4  ;;  %v450_v43 = vrot.slane %v449_v14, 1 }
  0x59   : > { %v455_v59 = vmax.f32 %v453_v41, %v454_v39  ;;  %v466_v48 = vrot.slane %v465_v26, 2  ;;  %v472_v3 = vrot.slane %v471_v40, 2  ;;  %v461_v13 = vmax.f32 %v459_v53, %v460_v35 }
  0x5a   : > { %v478_v61 = vrot.slane %v477_v7, 2  ;;  %v483_v57 = vmax.f32 %v1349_v36, %v482_v0  ;;  %v489_v51 = vmax.f32 %v1358_v45, %v488_v55  ;;  %v1569_v15 = vmax.f32 %v449_v14, %v450_v43 }
  0x5b   : > { %v456_v22 = vrot.slane %v455_v59, 1  ;;  %v467_v33 = vmax.f32 %v465_v26, %v466_v48  ;;  %v473_v20 = vmax.f32 %v471_v40, %v472_v3  ;;  %v462_v27 = vrot.slane %v461_v13, 1 }
  0x5c   : > { %v479_v56 = vmax.f32 %v477_v7, %v478_v61  ;;  %v484_v62 = vrot.slane %v483_v57, 2  ;;  %v490_v11 = vrot.slane %v489_v51, 2  ;;  %v494_v16 = vrot.slane %v1366_v54, 4  ;;  %v2043_v61 = vld [vmem:[#allocation2_spill] sm:$0xff] }
  0x5d   : > { %v1571_v4 = vmax.f32 %v455_v59, %v456_v22  ;;  %v468_v38 = vrot.slane %v467_v33, 1  ;;  %v474_v18 = vrot.slane %v473_v20, 1  ;;  %v1574_v46 = vmax.f32 %v461_v13, %v462_v27 }
  0x5e   : > { %v480_v36 = vrot.slane %v479_v56, 1  ;;  %v485_v28 = vmax.f32 %v483_v57, %v484_v62  ;;  %v491_v45 = vmax.f32 %v489_v51, %v490_v11  ;;  %v495_v41 = vmax.f32 %v1366_v54, %v494_v16  ;;  %v2044_v51 = vld [vmem:[#allocation3_spill] sm:$0xff] }
  0x5f   : > { %v1576_v23 = vmax.f32 %v467_v33, %v468_v38  ;;  %v1578_v29 = vmax.f32 %v473_v20, %v474_v18  ;;  %v500_v8 = vrot.slane %v1390_v34, 4  ;;  %v506_v14 = vrot.slane %v1401_v44, 4 }
  0x60   : > { %v1582_v42 = vmax.f32 %v479_v56, %v480_v36  ;;  %v486_v53 = vrot.slane %v485_v28, 1  ;;  %v492_v32 = vrot.slane %v491_v45, 1  ;;  %v496_v39 = vrot.slane %v495_v41, 2 }
  0x61   : > { %v501_v26 = vmax.f32 %v1390_v34, %v500_v8  ;;  %v512_v40 = vrot.slane %v1411_v50, 4  ;;  %v518_v35 = vrot.slane %v1421_v60, 4  ;;  %v507_v54 = vmax.f32 %v1401_v44, %v506_v14 }
  0x62   : > { %v1588_v7 = vmax.f32 %v485_v28, %v486_v53  ;;  %v1590_v0 = vmax.f32 %v491_v45, %v492_v32  ;;  %v524_v55 = vrot.slane %v1433_v10, 4  ;;  %v497_v43 = vmax.f32 %v495_v41, %v496_v39 }
  0x63   : > { %v502_v59 = vrot.slane %v501_v26, 2  ;;  %v513_v48 = vmax.f32 %v1411_v50, %v512_v40  ;;  %v519_v3 = vmax.f32 %v1421_v60, %v518_v35  ;;  %v508_v13 = vrot.slane %v507_v54, 2 }
  0x64   : > { %v525_v34 = vmax.f32 %v1433_v10, %v524_v55  ;;  %v530_v57 = vrot.slane %v2043_v61, 4  ;;  %v536_v22 = vrot.slane %v2044_v51, 4  ;;  %v498_v33 = vrot.slane %v497_v43, 1 }
  0x65   : > { %v503_v20 = vmax.f32 %v501_v26, %v502_v59  ;;  %v514_v27 = vrot.slane %v513_v48, 2  ;;  %v520_v56 = vrot.slane %v519_v3, 2  ;;  %v509_v44 = vmax.f32 %v507_v54, %v508_v13 }
  0x66   : > { %v526_v62 = vrot.slane %v525_v34, 2  ;;  %v531_v11 = vmax.f32 %v2043_v61, %v530_v57  ;;  %v537_v38 = vmax.f32 %v2044_v51, %v536_v22  ;;  %v499_v50 = vmax.f32 %v497_v43, %v498_v33 }
  0x67   : > { %v504_v18 = vrot.slane %v503_v20, 1  ;;  %v515_v60 = vmax.f32 %v513_v48, %v514_v27  ;;  %v521_v16 = vmax.f32 %v519_v3, %v520_v56  ;;  %v510_v36 = vrot.slane %v509_v44, 1 }
  0x68   : > { %v527_v10 = vmax.f32 %v525_v34, %v526_v62  ;;  %v532_v28 = vrot.slane %v531_v11, 2  ;;  %v538_v45 = vrot.slane %v537_v38, 2  ;;  %v542_v32 = vrot.slane %v1460_v2, 4 }
  0x69   : > { %v505_v41 = vmax.f32 %v503_v20, %v504_v18  ;;  %v516_v8 = vrot.slane %v515_v60, 1  ;;  %v522_v53 = vrot.slane %v521_v16, 1  ;;  %v511_v14 = vmax.f32 %v509_v44, %v510_v36 }
  0x6a   : > { %v528_v39 = vrot.slane %v527_v10, 1  ;;  %v533_v26 = vmax.f32 %v531_v11, %v532_v28  ;;  %v539_v40 = vmax.f32 %v537_v38, %v538_v45  ;;  %v543_v55 = vmax.f32 %v1460_v2, %v542_v32 }
  0x6b   : > { %v517_v35 = vmax.f32 %v515_v60, %v516_v8  ;;  %v523_v54 = vmax.f32 %v521_v16, %v522_v53  ;;  %v548_v43 = vsel %vm180_vm0, %v1507_v19, -inf  ;;  %v549_v13 = vsel %vm180_vm0, %v1510_v58, -inf }
  0x6c   : > { %v529_v59 = vmax.f32 %v527_v10, %v528_v39  ;;  %v534_v48 = vrot.slane %v533_v26, 1  ;;  %v540_v3 = vrot.slane %v539_v40, 1  ;;  %v544_v34 = vrot.slane %v543_v55, 2 }
  0x6d   : > { %v550_v61 = vsel %vm180_vm0, %v1512_v24, -inf  ;;  %v551_v57 = vsel %vm180_vm0, %v1514_v9, -inf  ;;  %v552_v51 = vsel %vm180_vm0, %v1518_v63, -inf  ;;  %v554_v19 = vsel %vm180_vm0, %v1524_v52, -inf }
  0x6e   : > { %v535_v2 = vmax.f32 %v533_v26, %v534_v48  ;;  %v541_v22 = vmax.f32 %v539_v40, %v540_v3  ;;  %v553_v33 = vmax.f32 %v548_v43, %v552_v51  ;;  %v545_v20 = vmax.f32 %v543_v55, %v544_v34  ;;  %v608_v43 = vld [vmem:[%s1288_s13] sm:$0x1f]  ;;  %v609_v48 = vld [vmem:[%s1288_s13 + $0x10] sm:$0x1f] }
  0x6f   : > { %v555_v27 = vmax.f32 %v549_v13, %v554_v19  ;;  %v556_v58 = vsel %vm180_vm0, %v1526_v6, -inf  ;;  %v558_v24 = vsel %vm180_vm0, %v1537_v49, -inf  ;;  %v563_v9 = vsel %vm180_vm0, %v1571_v4, -inf  ;;  %v610_v13 = vld [vmem:[%s1288_s13 + $0x20] sm:$0x1f] }
  0x70   : > { %v557_v56 = vmax.f32 %v550_v61, %v556_v58  ;;  %v559_v44 = vmax.f32 %v551_v57, %v558_v24  ;;  %v564_v63 = vsel %vm180_vm0, %v1574_v46, -inf  ;;  %v546_v62 = vrot.slane %v545_v20, 1  ;;  %v611_v51 = vld [vmem:[%s1288_s13 + $0x30] sm:$0x1f] }
  0x71   : > { %v1623_v11 = vmax.f32 %v553_v33, %v555_v27  ;;  %v565_v52 = vsel %vm180_vm0, %v1576_v23, -inf  ;;  %v566_v6 = vsel %vm180_vm0, %v1578_v29, -inf  ;;  %v567_v49 = vsel %vm180_vm0, %v1582_v42, -inf  ;;  %v613_v19 = vld [vmem:[%s1288_s13 + $0x50] sm:$0x1f] }
  0x72   : > { %v1629_v38 = vmax.f32 %v557_v56, %v559_v44  ;;  %v569_v4 = vsel %vm180_vm0, %v1588_v7, -inf  ;;  %v571_v46 = vsel %vm180_vm0, %v1590_v0, -inf  ;;  %v547_v18 = vmax.f32 %v545_v20, %v546_v62 }
  0x73   : > { %2045 = vst [vmem:[#allocation2_spill] sm:$0xff] %v1623_v11  ;;  %v568_v60 = vmax.f32 %v563_v9, %v567_v49  ;;  %v570_v16 = vmax.f32 %v564_v63, %v569_v4  ;;  %v572_v36 = vmax.f32 %v565_v52, %v571_v46  ;;  %v573_v29 = vsel %vm180_vm0, %v499_v50, -inf  ;;  %v615_v52 = vld [vmem:[%s1288_s13 + $0x70] sm:$0x1f] }
  0x74   : > { %2046 = vst [vmem:[#allocation3_spill] sm:$0xff] %v1629_v38  ;;  %v578_v10 = vsel %vm180_vm0, %v1539_v37, -inf  ;;  %v579_v42 = vsel %vm180_vm0, %v1542_v1, -inf  ;;  %v574_v28 = vmax.f32 %v566_v6, %v573_v29  ;;  %v580_v0 = vsel %vm180_vm0, %v1544_v5, -inf }
  0x75   : > { %v1644_v7 = vmax.f32 %v568_v60, %v570_v16  ;;  %v581_v45 = vsel %vm180_vm0, %v1546_v12, -inf  ;;  %v582_v8 = vsel %vm180_vm0, %v1550_v25, -inf  ;;  %v584_v50 = vsel %vm180_vm0, %v1556_v30, -inf }
  0x76   : > { %v586_v37 = vsel %vm180_vm0, %v1558_v47, -inf  ;;  %v588_v1 = vsel %vm180_vm0, %v1569_v15, -inf  ;;  %v1658_v53 = vmax.f32 %v572_v36, %v574_v28  ;;  %v583_v5 = vmax.f32 %v578_v10, %v582_v8 }
  0x77   : > { %2047 = vst [vmem:[#allocation6_spill] sm:$0xff] %v1644_v7  ;;  %v585_v32 = vmax.f32 %v579_v42, %v584_v50  ;;  %v587_v12 = vmax.f32 %v580_v0, %v586_v37  ;;  %v589_v39 = vmax.f32 %v581_v45, %v588_v1  ;;  %v593_v25 = vsel %vm180_vm0, %v505_v41, -inf }
  0x78   : > { %2048 = vst [vmem:[#allocation7_spill] sm:$0xff] %v1658_v53  ;;  %v594_v26 = vsel %vm180_vm0, %v511_v14, -inf  ;;  %v595_v30 = vsel %vm180_vm0, %v517_v35, -inf  ;;  %v596_v15 = vsel %vm180_vm0, %v523_v54, -inf  ;;  %v597_v55 = vsel %vm180_vm0, %v529_v59, -inf }
  0x79   : > { %v1665_v40 = vmax.f32 %v583_v5, %v585_v32  ;;  %v1671_v3 = vmax.f32 %v587_v12, %v589_v39  ;;  %v598_v41 = vmax.f32 %v593_v25, %v597_v55  ;;  %v599_v14 = vsel %vm180_vm0, %v535_v2, -inf  ;;  %v612_v54 = vld [vmem:[%s1288_s13 + $0x40] sm:$0x1f] }
  0x7a   : > { %v601_v35 = vsel %vm180_vm0, %v541_v22, -inf  ;;  %v600_v34 = vmax.f32 %v594_v26, %v599_v14  ;;  %v603_v57 = vsel %vm180_vm0, %v547_v18, -inf  ;;  %v625_v20 = vsel %vm624_vm1, %v608_v43, -inf  ;;  %v614_v22 = vld [vmem:[%s1288_s13 + $0x60] sm:$0x1f] }
  0x7b   : > { %2049 = vst [vmem:[#allocation8_spill] sm:$0xff] %v1665_v40  ;;  %v602_v61 = vmax.f32 %v595_v30, %v601_v35  ;;  %v604_v33 = vmax.f32 %v596_v15, %v603_v57  ;;  %v632_v2 = vsel %vm624_vm1, %v609_v48, -inf  ;;  %v626_v58 = vrot.slane %v625_v20, 4  ;;  %v617_v30 = vld [vmem:[%s1288_s13 + $0x90] sm:$0x1f] }
  0x7c   : > { %2050 = vst [vmem:[#allocation9_spill] sm:$0xff] %v1671_v3  ;;  %v1684_v27 = vmax.f32 %v598_v41, %v600_v34  ;;  %v633_v24 = vrot.slane %v632_v2, 4  ;;  %v639_v56 = vsel %vm624_vm1, %v610_v13, -inf  ;;  %v646_v63 = vsel %vm624_vm1, %v611_v51, -inf  ;;  %v616_v41 = vld [vmem:[%s1288_s13 + $0x80] sm:$0x1f] }
  0x7d   : > { %v1688_v44 = vmax.f32 %v602_v61, %v604_v33  ;;  %v640_v9 = vrot.slane %v639_v56, 4  ;;  %v653_v62 = vsel %vm624_vm1, %v612_v54, -inf  ;;  %v627_v6 = vmax.f32 %v625_v20, %v626_v58  ;;  %v618_v61 = vld [vmem:[%s1288_s13 + $0xa0] sm:$0x1f] }
  0x7e   : > { %2051 = vst [vmem:[#allocation10_spill] sm:$0xff] %v1684_v27  ;;  %v634_v49 = vmax.f32 %v632_v2, %v633_v24  ;;  %v647_v4 = vrot.slane %v646_v63, 4  ;;  %v654_v46 = vrot.slane %v653_v62, 4  ;;  %v660_v16 = vsel %vm624_vm1, %v613_v19, -inf  ;;  %v619_v19 = vld [vmem:[%s1288_s13 + $0xb0] sm:$0x1f] }
  0x7f   : > { %2052 = vst [vmem:[#allocation11_spill] sm:$0xff] %v1688_v44  ;;  %v641_v60 = vmax.f32 %v639_v56, %v640_v9  ;;  %v667_v36 = vsel %vm624_vm1, %v614_v22, -inf  ;;  %v628_v29 = vrot.slane %v627_v6, 2  ;;  %v661_v45 = vrot.slane %v660_v16, 4  ;;  %v620_v20 = vld [vmem:[%s1288_s13 + $0xc0] sm:$0x1f] }
  0x80   : > { %v635_v10 = vrot.slane %v634_v49, 2  ;;  %v648_v42 = vmax.f32 %v646_v63, %v647_v4  ;;  %v655_v28 = vmax.f32 %v653_v62, %v654_v46  ;;  %v668_v8 = vrot.slane %v667_v36, 4 }
  0x81   : > { %v642_v0 = vrot.slane %v641_v60, 2  ;;  %v674_v50 = vsel %vm624_vm1, %v615_v52, -inf  ;;  %v629_v37 = vmax.f32 %v627_v6, %v628_v29  ;;  %v662_v39 = vmax.f32 %v660_v16, %v661_v45  ;;  %v621_v52 = vld [vmem:[%s1288_s13 + $0xd0] sm:$0x1f] }
  0x82   : > { %v636_v1 = vmax.f32 %v634_v49, %v635_v10  ;;  %v649_v5 = vrot.slane %v648_v42, 2  ;;  %v656_v32 = vrot.slane %v655_v28, 2  ;;  %v669_v25 = vmax.f32 %v667_v36, %v668_v8  ;;  %v623_v8 = vld [vmem:[%s1288_s13 + $0xf0] sm:$0x1f] }
  0x83   : > { %v643_v12 = vmax.f32 %v641_v60, %v642_v0  ;;  %v675_v26 = vrot.slane %v674_v50, 4  ;;  %v630_v15 = vrot.slane %v629_v37, 1  ;;  %v663_v35 = vrot.slane %v662_v39, 2  ;;  %v622_v60 = vld [vmem:[%s1288_s13 + $0xe0] sm:$0x1f] }
  0x84   : > { %v637_v55 = vrot.slane %v636_v1, 1  ;;  %v650_v43 = vmax.f32 %v648_v42, %v649_v5  ;;  %v657_v48 = vmax.f32 %v655_v28, %v656_v32  ;;  %v670_v13 = vrot.slane %v669_v25, 2 }
  0x85   : > { %v644_v14 = vrot.slane %v643_v12, 1  ;;  %v676_v34 = vmax.f32 %v674_v50, %v675_v26  ;;  %v1701_v57 = vmax.f32 %v629_v37, %v630_v15  ;;  %v664_v22 = vmax.f32 %v662_v39, %v663_v35 }
  0x86   : > { %v1703_v51 = vmax.f32 %v636_v1, %v637_v55  ;;  %v651_v54 = vrot.slane %v650_v43, 1  ;;  %v658_v33 = vrot.slane %v657_v48, 1  ;;  %v671_v58 = vmax.f32 %v669_v25, %v670_v13 }
  0x87   : > { %v1707_v2 = vmax.f32 %v643_v12, %v644_v14  ;;  %v677_v24 = vrot.slane %v676_v34, 2  ;;  %v681_v63 = vsel %vm624_vm1, %v616_v41, -inf  ;;  %v688_v62 = vsel %vm624_vm1, %v617_v30, -inf }
  0x88   : > { %v1709_v56 = vmax.f32 %v650_v43, %v651_v54  ;;  %v1711_v9 = vmax.f32 %v657_v48, %v658_v33  ;;  %v665_v6 = vrot.slane %v664_v22, 1  ;;  %v672_v49 = vrot.slane %v671_v58, 1 }
  0x89   : > { %v678_v4 = vmax.f32 %v676_v34, %v677_v24  ;;  %v682_v46 = vrot.slane %v681_v63, 4  ;;  %v689_v16 = vrot.slane %v688_v62, 4  ;;  %v695_v36 = vsel %vm624_vm1, %v618_v61, -inf }
  0x8a   : > { %v702_v29 = vsel %vm624_vm1, %v619_v19, -inf  ;;  %v709_v10 = vsel %vm624_vm1, %v620_v20, -inf  ;;  %v1720_v42 = vmax.f32 %v664_v22, %v665_v6  ;;  %v1722_v28 = vmax.f32 %v671_v58, %v672_v49 }
  0x8b   : > { %v679_v0 = vrot.slane %v678_v4, 1  ;;  %v683_v45 = vmax.f32 %v681_v63, %v682_v46  ;;  %v690_v50 = vmax.f32 %v688_v62, %v689_v16  ;;  %v696_v37 = vrot.slane %v695_v36, 4  ;;  %v741_v46 = vld [vmem:[%s1288_s13 + $0x45] sm:$0x3f] }
  0x8c   : > { %v703_v1 = vrot.slane %v702_v29, 4  ;;  %v710_v5 = vrot.slane %v709_v10, 4  ;;  %v716_v39 = vsel %vm624_vm1, %v621_v52, -inf  ;;  %v723_v25 = vsel %vm624_vm1, %v622_v60, -inf }
  0x8d   : > { %v1725_v32 = vmax.f32 %v678_v4, %v679_v0  ;;  %v684_v12 = vrot.slane %v683_v45, 2  ;;  %v691_v26 = vrot.slane %v690_v50, 2  ;;  %v697_v30 = vmax.f32 %v695_v36, %v696_v37  ;;  %v737_v4 = vld [vmem:[%s1288_s13 + $0x5] sm:$0x3f]  ;;  %v740_v37 = vld [vmem:[%s1288_s13 + $0x35] sm:$0x3f] }
  0x8e   : > { %v704_v15 = vmax.f32 %v702_v29, %v703_v1  ;;  %v711_v55 = vmax.f32 %v709_v10, %v710_v5  ;;  %v717_v48 = vrot.slane %v716_v39, 4  ;;  %v724_v41 = vrot.slane %v723_v25, 4  ;;  %v738_v10 = vld [vmem:[%s1288_s13 + $0x15] sm:$0x3f] }
  0x8f   : > { %v685_v43 = vmax.f32 %v683_v45, %v684_v12  ;;  %v730_v14 = vsel %vm624_vm1, %v623_v8, -inf  ;;  %v692_v35 = vmax.f32 %v690_v50, %v691_v26  ;;  %v698_v13 = vrot.slane %v697_v30, 2  ;;  %v739_v50 = vld [vmem:[%s1288_s13 + $0x25] sm:$0x3f] }
  0x90   : > { %v705_v34 = vrot.slane %v704_v15, 2  ;;  %v712_v61 = vrot.slane %v711_v55, 2  ;;  %v718_v33 = vmax.f32 %v716_v39, %v717_v48  ;;  %v725_v19 = vmax.f32 %v723_v25, %v724_v41 }
  0x91   : > { %v686_v54 = vrot.slane %v685_v43, 1  ;;  %v731_v20 = vrot.slane %v730_v14, 4  ;;  %v693_v22 = vrot.slane %v692_v35, 1  ;;  %v699_v58 = vmax.f32 %v697_v30, %v698_v13 }
  0x92   : > { %v706_v24 = vmax.f32 %v704_v15, %v705_v34  ;;  %v713_v63 = vmax.f32 %v711_v55, %v712_v61  ;;  %v719_v52 = vrot.slane %v718_v33, 2  ;;  %v726_v6 = vrot.slane %v725_v19, 2  ;;  %v742_v15 = vld [vmem:[%s1288_s13 + $0x55] sm:$0x3f] }
  0x93   : > { %v1730_v62 = vmax.f32 %v685_v43, %v686_v54  ;;  %v732_v49 = vmax.f32 %v730_v14, %v731_v20  ;;  %v1734_v60 = vmax.f32 %v692_v35, %v693_v22  ;;  %v700_v16 = vrot.slane %v699_v58, 1  ;;  %v743_v43 = vld [vmem:[%s1288_s13 + $0x65] sm:$0x3f] }
  0x94   : > { %v707_v36 = vrot.slane %v706_v24, 1  ;;  %v714_v29 = vrot.slane %v713_v63, 1  ;;  %v720_v0 = vmax.f32 %v718_v33, %v719_v52  ;;  %v727_v45 = vmax.f32 %v725_v19, %v726_v6  ;;  %v744_v33 = vld [vmem:[%s1288_s13 + $0x75] sm:$0x3f] }
  0x95   : > { %v733_v8 = vrot.slane %v732_v49, 2  ;;  %v1739_v1 = vmax.f32 %v699_v58, %v700_v16  ;;  %v754_v39 = vsel %vm753_vm2, %v737_v4, -inf  ;;  %v761_v48 = vsel %vm753_vm2, %v738_v10, -inf }
  0x96   : > { %v1741_v5 = vmax.f32 %v706_v24, %v707_v36  ;;  %v1743_v12 = vmax.f32 %v713_v63, %v714_v29  ;;  %v721_v25 = vrot.slane %v720_v0, 1  ;;  %v728_v26 = vrot.slane %v727_v45, 1 }
  0x97   : > { %v734_v30 = vmax.f32 %v732_v49, %v733_v8  ;;  %v755_v55 = vrot.slane %v754_v39, 4  ;;  %v768_v41 = vsel %vm753_vm2, %v739_v50, -inf  ;;  %v775_v14 = vsel %vm753_vm2, %v740_v37, -inf }
  0x98   : > { %2053 = vst [vmem:[#allocation12_spill] sm:$0xff] %v1743_v12  ;;  %v782_v35 = vsel %vm753_vm2, %v741_v46, -inf  ;;  %v1752_v13 = vmax.f32 %v720_v0, %v721_v25  ;;  %v1754_v34 = vmax.f32 %v727_v45, %v728_v26  ;;  %v762_v19 = vrot.slane %v761_v48, 4 }
  0x99   : > { %v735_v61 = vrot.slane %v734_v30, 1  ;;  %v756_v54 = vmax.f32 %v754_v39, %v755_v55  ;;  %v769_v20 = vrot.slane %v768_v41, 4  ;;  %v776_v22 = vrot.slane %v775_v14, 4 }
  0x9a   : > { %2054 = vst [vmem:[#allocation13_spill] sm:$0xff] %v1752_v13  ;;  %v783_v58 = vrot.slane %v782_v35, 4  ;;  %v789_v52 = vsel %vm753_vm2, %v742_v15, -inf  ;;  %v796_v6 = vsel %vm753_vm2, %v743_v43, -inf  ;;  %v763_v49 = vmax.f32 %v761_v48, %v762_v19  ;;  %v745_v15 = vld [vmem:[%s1288_s13 + $0x85] sm:$0x3f] }
  0x9b   : > { %2055 = vst [vmem:[#allocation14_spill] sm:$0xff] %v1754_v34  ;;  %v1757_v24 = vmax.f32 %v734_v30, %v735_v61  ;;  %v757_v63 = vrot.slane %v756_v54, 2  ;;  %v770_v4 = vmax.f32 %v768_v41, %v769_v20  ;;  %v777_v46 = vmax.f32 %v775_v14, %v776_v22  ;;  %v746_v14 = vld [vmem:[%s1288_s13 + $0x95] sm:$0x3f]  ;;  %v747_v19 = vld [vmem:[%s1288_s13 + $0xa5] sm:$0x3f] }
  0x9c   : > { %v784_v16 = vmax.f32 %v782_v35, %v783_v58  ;;  %v790_v29 = vrot.slane %v789_v52, 4  ;;  %v797_v10 = vrot.slane %v796_v6, 4  ;;  %v803_v0 = vsel %vm753_vm2, %v744_v33, -inf }
  0x9d   : > { %2056 = vst [vmem:[#allocation15_spill] sm:$0xff] %v1757_v24  ;;  %v758_v36 = vmax.f32 %v756_v54, %v757_v63  ;;  %v764_v45 = vrot.slane %v763_v49, 2  ;;  %v771_v8 = vrot.slane %v770_v4, 2  ;;  %v778_v50 = vrot.slane %v777_v46, 2 }
  0x9e   : > { %v785_v37 = vrot.slane %v784_v16, 2  ;;  %v791_v25 = vmax.f32 %v789_v52, %v790_v29  ;;  %v798_v26 = vmax.f32 %v796_v6, %v797_v10  ;;  %v804_v30 = vrot.slane %v803_v0, 4  ;;  %v748_v52 = vld [vmem:[%s1288_s13 + $0xb5] sm:$0x3f]  ;;  %v749_v6 = vld [vmem:[%s1288_s13 + $0xc5] sm:$0x3f] }
  0x9f   : > { %v759_v39 = vrot.slane %v758_v36, 1  ;;  %v765_v55 = vmax.f32 %v763_v49, %v764_v45  ;;  %v772_v43 = vmax.f32 %v770_v4, %v771_v8  ;;  %v779_v48 = vmax.f32 %v777_v46, %v778_v50  ;;  %v750_v45 = vld [vmem:[%s1288_s13 + $0xd5] sm:$0x3f] }
  0xa0   : > { %v786_v41 = vmax.f32 %v784_v16, %v785_v37  ;;  %v792_v61 = vrot.slane %v791_v25, 2  ;;  %v799_v54 = vrot.slane %v798_v26, 2  ;;  %v805_v33 = vmax.f32 %v803_v0, %v804_v30  ;;  %v751_v30 = vld [vmem:[%s1288_s13 + $0xe5] sm:$0x3f] }
  0xa1   : > { %v1764_v35 = vmax.f32 %v758_v36, %v759_v39  ;;  %v766_v20 = vrot.slane %v765_v55, 1  ;;  %v773_v22 = vrot.slane %v772_v43, 1  ;;  %v780_v58 = vrot.slane %v779_v48, 1 }
  0xa2   : > { %v787_v63 = vrot.slane %v786_v41, 1  ;;  %v793_v29 = vmax.f32 %v791_v25, %v792_v61  ;;  %v800_v49 = vmax.f32 %v798_v26, %v799_v54  ;;  %v806_v4 = vrot.slane %v805_v33, 2  ;;  %v752_v54 = vld [vmem:[%s1288_s13 + $0xf5] sm:$0x3f] }
  0xa3   : > { %v810_v46 = vsel %vm753_vm2, %v745_v15, -inf  ;;  %v1770_v16 = vmax.f32 %v765_v55, %v766_v20  ;;  %v1772_v36 = vmax.f32 %v772_v43, %v773_v22  ;;  %v1774_v10 = vmax.f32 %v779_v48, %v780_v58 }
  0xa4   : > { %v1776_v0 = vmax.f32 %v786_v41, %v787_v63  ;;  %v794_v8 = vrot.slane %v793_v29, 1  ;;  %v801_v50 = vrot.slane %v800_v49, 1  ;;  %v807_v37 = vmax.f32 %v805_v33, %v806_v4 }
  0xa5   : > { %v811_v39 = vrot.slane %v810_v46, 4  ;;  %v817_v25 = vsel %vm753_vm2, %v746_v14, -inf  ;;  %v824_v26 = vsel %vm753_vm2, %v747_v19, -inf  ;;  %v831_v15 = vsel %vm753_vm2, %v748_v52, -inf }
  0xa6   : > { %v838_v55 = vsel %vm753_vm2, %v749_v6, -inf  ;;  %v1784_v43 = vmax.f32 %v793_v29, %v794_v8  ;;  %v1786_v48 = vmax.f32 %v800_v49, %v801_v50  ;;  %v808_v41 = vrot.slane %v807_v37, 1 }
  0xa7   : > { %v812_v61 = vmax.f32 %v810_v46, %v811_v39  ;;  %v818_v20 = vrot.slane %v817_v25, 4  ;;  %v825_v22 = vrot.slane %v824_v26, 4  ;;  %v832_v33 = vrot.slane %v831_v15, 4 }
  0xa8   : > { %v839_v58 = vrot.slane %v838_v55, 4  ;;  %v1789_v63 = vmax.f32 %v807_v37, %v808_v41  ;;  %v845_v19 = vsel %vm753_vm2, %v750_v45, -inf  ;;  %v852_v52 = vsel %vm753_vm2, %v751_v30, -inf }
  0xa9   : > { %v813_v14 = vrot.slane %v812_v61, 2  ;;  %v819_v4 = vmax.f32 %v817_v25, %v818_v20  ;;  %v826_v6 = vmax.f32 %v824_v26, %v825_v22  ;;  %v833_v29 = vmax.f32 %v831_v15, %v832_v33 }
  0xaa   : > { %v840_v8 = vmax.f32 %v838_v55, %v839_v58  ;;  %v846_v50 = vrot.slane %v845_v19, 4  ;;  %v853_v46 = vrot.slane %v852_v52, 4  ;;  %v859_v39 = vsel %vm753_vm2, %v752_v54, -inf  ;;  %v870_v58 = vld [vmem:[%s1288_s13 + $0x4b] sm:$0x1f] }
  0xab   : > { %v814_v49 = vmax.f32 %v812_v61, %v813_v14  ;;  %v820_v18 = vrot.slane %v819_v4, 2  ;;  %v827_v59 = vrot.slane %v826_v6, 2  ;;  %v834_v37 = vrot.slane %v833_v29, 2  ;;  %v866_v61 = vld [vmem:[%s1288_s13 + $0xb] sm:$0x1f] }
  0xac   : > { %v841_v41 = vrot.slane %v840_v8, 2  ;;  %v847_v21 = vmax.f32 %v845_v19, %v846_v50  ;;  %v854_v45 = vmax.f32 %v852_v52, %v853_v46  ;;  %v860_v30 = vrot.slane %v859_v39, 4  ;;  %v867_v52 = vld [vmem:[%s1288_s13 + $0x1b] sm:$0x1f] }
  0xad   : > { %v815_v47 = vrot.slane %v814_v49, 1  ;;  %v821_v25 = vmax.f32 %v819_v4, %v820_v18  ;;  %v828_v26 = vmax.f32 %v826_v6, %v827_v59  ;;  %v835_v15 = vmax.f32 %v833_v29, %v834_v37  ;;  %v868_v6 = vld [vmem:[%s1288_s13 + $0x2b] sm:$0x1f]  ;;  %v869_v29 = vld [vmem:[%s1288_s13 + $0x3b] sm:$0x1f] }
  0xae   : > { %v842_v55 = vmax.f32 %v840_v8, %v841_v41  ;;  %v848_v54 = vrot.slane %v847_v21, 2  ;;  %v855_v22 = vrot.slane %v854_v45, 2  ;;  %v861_v33 = vmax.f32 %v859_v39, %v860_v30  ;;  %v871_v30 = vld [vmem:[%s1288_s13 + $0x5b] sm:$0x1f] }
  0xaf   : > { %v1795_v20 = vmax.f32 %v814_v49, %v815_v47  ;;  %v822_v14 = vrot.slane %v821_v25, 1  ;;  %v829_v23 = vrot.slane %v828_v26, 1  ;;  %v836_v44 = vrot.slane %v835_v15, 1 }
  0xb0   : > { %v843_v19 = vrot.slane %v842_v55, 1  ;;  %v849_v18 = vmax.f32 %v847_v21, %v848_v54  ;;  %v856_v59 = vmax.f32 %v854_v45, %v855_v22  ;;  %v862_v4 = vrot.slane %v861_v33, 2  ;;  %v872_v45 = vld [vmem:[%s1288_s13 + $0x6b] sm:$0x1f] }
  0xb1   : > { %v882_v8 = vsel %vm624_vm1, %v866_v61, -inf  ;;  %v1802_v47 = vmax.f32 %v821_v25, %v822_v14  ;;  %v1804_v49 = vmax.f32 %v828_v26, %v829_v23  ;;  %v1806_v50 = vmax.f32 %v835_v15, %v836_v44  ;;  %v873_v61 = vld [vmem:[%s1288_s13 + $0x7b] sm:$0x1f] }
  0xb2   : > { %v1808_v46 = vmax.f32 %v842_v55, %v843_v19  ;;  %v850_v39 = vrot.slane %v849_v18, 1  ;;  %v857_v37 = vrot.slane %v856_v59, 1  ;;  %v863_v41 = vmax.f32 %v861_v33, %v862_v4 }
  0xb3   : > { %2057 = vst [vmem:[#allocation16_spill] sm:$0xff] %v1806_v50  ;;  %v883_v21 = vrot.slane %v882_v8, 4  ;;  %v889_v54 = vsel %vm624_vm1, %v867_v52, -inf  ;;  %v896_v22 = vsel %vm624_vm1, %v868_v6, -inf  ;;  %v903_v25 = vsel %vm624_vm1, %v869_v29, -inf }
  0xb4   : > { %2058 = vst [vmem:[#allocation17_spill] sm:$0xff] %v1808_v46  ;;  %v910_v23 = vsel %vm624_vm1, %v870_v58, -inf  ;;  %v1816_v26 = vmax.f32 %v849_v18, %v850_v39  ;;  %v1818_v44 = vmax.f32 %v856_v59, %v857_v37  ;;  %v864_v15 = vrot.slane %v863_v41, 1 }
  0xb5   : > { %v884_v55 = vmax.f32 %v882_v8, %v883_v21  ;;  %v890_v14 = vrot.slane %v889_v54, 4  ;;  %v897_v33 = vrot.slane %v896_v22, 4  ;;  %v904_v19 = vrot.slane %v903_v25, 4 }
  0xb6   : > { %2059 = vst [vmem:[#allocation18_spill] sm:$0xff] %v1816_v26  ;;  %v911_v4 = vrot.slane %v910_v23, 4  ;;  %v1821_v27 = vmax.f32 %v863_v41, %v864_v15  ;;  %v917_v6 = vsel %vm624_vm1, %v871_v30, -inf  ;;  %v924_v29 = vsel %vm624_vm1, %v872_v45, -inf }
  0xb7   : > { %2060 = vst [vmem:[#allocation19_spill] sm:$0xff] %v1818_v44  ;;  %v885_v52 = vrot.slane %v884_v55, 2  ;;  %v891_v3 = vmax.f32 %v889_v54, %v890_v14  ;;  %v898_v58 = vmax.f32 %v896_v22, %v897_v33  ;;  %v905_v18 = vmax.f32 %v903_v25, %v904_v19  ;;  %v874_v54 = vld [vmem:[%s1288_s13 + $0x8b] sm:$0x1f]  ;;  %v875_v14 = vld [vmem:[%s1288_s13 + $0x9b] sm:$0x1f] }
  0xb8   : > { %2061 = vst [vmem:[#allocation20_spill] sm:$0xff] %v1821_v27  ;;  %v912_v59 = vmax.f32 %v910_v23, %v911_v4  ;;  %v918_v37 = vrot.slane %v917_v6, 4  ;;  %v925_v8 = vrot.slane %v924_v29, 4  ;;  %v931_v21 = vsel %vm624_vm1, %v873_v61, -inf  ;;  %v880_v27 = vld [vmem:[%s1288_s13 + $0xeb] sm:$0x1f] }
  0xb9   : > { %v886_v39 = vmax.f32 %v884_v55, %v885_v52  ;;  %v892_v40 = vrot.slane %v891_v3, 2  ;;  %v899_v53 = vrot.slane %v898_v58, 2  ;;  %v906_v41 = vrot.slane %v905_v18, 2  ;;  %v876_v52 = vld [vmem:[%s1288_s13 + $0xab] sm:$0x1f] }
  0xba   : > { %v913_v15 = vrot.slane %v912_v59, 2  ;;  %v919_v30 = vmax.f32 %v917_v6, %v918_v37  ;;  %v926_v31 = vmax.f32 %v924_v29, %v925_v8  ;;  %v932_v45 = vrot.slane %v931_v21, 4  ;;  %v877_v37 = vld [vmem:[%s1288_s13 + $0xbb] sm:$0x1f]  ;;  %v878_v8 = vld [vmem:[%s1288_s13 + $0xcb] sm:$0x1f] }
  0xbb   : > { %v887_v7 = vrot.slane %v886_v39, 1  ;;  %v893_v22 = vmax.f32 %v891_v3, %v892_v40  ;;  %v900_v25 = vmax.f32 %v898_v58, %v899_v53  ;;  %v907_v23 = vmax.f32 %v905_v18, %v906_v41 }
  0xbc   : > { %v914_v55 = vmax.f32 %v912_v59, %v913_v15  ;;  %v920_v61 = vrot.slane %v919_v30, 2  ;;  %v927_v19 = vrot.slane %v926_v31, 2  ;;  %v933_v4 = vmax.f32 %v931_v21, %v932_v45 }
  0xbd   : > { %v1828_v33 = vmax.f32 %v886_v39, %v887_v7  ;;  %v894_v17 = vrot.slane %v893_v22, 1  ;;  %v901_v38 = vrot.slane %v900_v25, 1  ;;  %v908_v6 = vrot.slane %v907_v23, 1  ;;  %v879_v39 = vld [vmem:[%s1288_s13 + $0xdb] sm:$0x1f] }
  0xbe   : > { %v915_v29 = vrot.slane %v914_v55, 1  ;;  %v921_v11 = vmax.f32 %v919_v30, %v920_v61  ;;  %v928_v40 = vmax.f32 %v926_v31, %v927_v19  ;;  %v934_v53 = vrot.slane %v933_v4, 2 }
  0xbf   : > { %v938_v3 = vsel %vm624_vm1, %v874_v54, -inf  ;;  %v1834_v58 = vmax.f32 %v893_v22, %v894_v17  ;;  %v1836_v7 = vmax.f32 %v900_v25, %v901_v38  ;;  %v1838_v18 = vmax.f32 %v907_v23, %v908_v6 }
  0xc0   : > { %v1840_v59 = vmax.f32 %v914_v55, %v915_v29  ;;  %v922_v21 = vrot.slane %v921_v11, 1  ;;  %v929_v41 = vrot.slane %v928_v40, 1  ;;  %v935_v15 = vmax.f32 %v933_v4, %v934_v53  ;;  %v881_v55 = vld [vmem:[%s1288_s13 + $0xfb] sm:$0x1f] }
  0xc1   : > { %v939_v45 = vrot.slane %v938_v3, 4  ;;  %v945_v31 = vsel %vm624_vm1, %v875_v14, -inf  ;;  %v952_v30 = vsel %vm624_vm1, %v876_v52, -inf  ;;  %v959_v17 = vsel %vm624_vm1, %v877_v37, -inf }
  0xc2   : > { %v966_v38 = vsel %vm624_vm1, %v878_v8, -inf  ;;  %v1848_v54 = vmax.f32 %v921_v11, %v922_v21  ;;  %v1850_v22 = vmax.f32 %v928_v40, %v929_v41  ;;  %v936_v25 = vrot.slane %v935_v15, 1 }
  0xc3   : > { %v940_v23 = vmax.f32 %v938_v3, %v939_v45  ;;  %v946_v61 = vrot.slane %v945_v31, 4  ;;  %v953_v19 = vrot.slane %v952_v30, 4  ;;  %v960_v4 = vrot.slane %v959_v17, 4 }
  0xc4   : > { %v967_v6 = vrot.slane %v966_v38, 4  ;;  %v1853_v29 = vmax.f32 %v935_v15, %v936_v25  ;;  %v973_v52 = vsel %vm624_vm1, %v879_v39, -inf  ;;  %v980_v37 = vsel %vm624_vm1, %v880_v27, -inf }
  0xc5   : > { %v941_v14 = vrot.slane %v940_v23, 2  ;;  %v947_v53 = vmax.f32 %v945_v31, %v946_v61  ;;  %v954_v8 = vmax.f32 %v952_v30, %v953_v19  ;;  %v961_v11 = vmax.f32 %v959_v17, %v960_v4 }
  0xc6   : > { %v968_v21 = vmax.f32 %v966_v38, %v967_v6  ;;  %v974_v41 = vrot.slane %v973_v52, 4  ;;  %v981_v44 = vrot.slane %v980_v37, 4  ;;  %v987_v3 = vsel %vm624_vm1, %v881_v55, -inf }
  0xc7   : > { %v942_v40 = vmax.f32 %v940_v23, %v941_v14  ;;  %v948_v45 = vrot.slane %v947_v53, 2  ;;  %v955_v26 = vrot.slane %v954_v8, 2  ;;  %v962_v46 = vrot.slane %v961_v11, 2 }
  0xc8   : > { %v969_v50 = vrot.slane %v968_v21, 2  ;;  %v975_v25 = vmax.f32 %v973_v52, %v974_v41  ;;  %v982_v24 = vmax.f32 %v980_v37, %v981_v44  ;;  %v988_v34 = vrot.slane %v987_v3, 4 }
  0xc9   : > { %v943_v15 = vrot.slane %v942_v40, 1  ;;  %v949_v39 = vmax.f32 %v947_v53, %v948_v45  ;;  %v956_v13 = vmax.f32 %v954_v8, %v955_v26  ;;  %v963_v27 = vmax.f32 %v961_v11, %v962_v46 }
  0xca   : > { %v970_v31 = vmax.f32 %v968_v21, %v969_v50  ;;  %v976_v17 = vrot.slane %v975_v25, 2  ;;  %v983_v38 = vrot.slane %v982_v24, 2  ;;  %v989_v23 = vmax.f32 %v987_v3, %v988_v34 }
  0xcb   : > { %v1858_v30 = vmax.f32 %v942_v40, %v943_v15  ;;  %v950_v61 = vrot.slane %v949_v39, 1  ;;  %v957_v19 = vrot.slane %v956_v13, 1  ;;  %v964_v55 = vrot.slane %v963_v27, 1 }
  0xcc   : > { %v971_v4 = vrot.slane %v970_v31, 1  ;;  %v977_v6 = vmax.f32 %v975_v25, %v976_v17  ;;  %v984_v14 = vmax.f32 %v982_v24, %v983_v38  ;;  %v990_v12 = vrot.slane %v989_v23, 2 }
  0xcd   : > { %v994_v44 = vsel %vm180_vm0, %v1701_v57, -inf  ;;  %v1862_v52 = vmax.f32 %v949_v39, %v950_v61  ;;  %v1864_v26 = vmax.f32 %v956_v13, %v957_v19  ;;  %v1866_v50 = vmax.f32 %v963_v27, %v964_v55 }
  0xce   : > { %v1868_v46 = vmax.f32 %v970_v31, %v971_v4  ;;  %v978_v37 = vrot.slane %v977_v6, 1  ;;  %v985_v34 = vrot.slane %v984_v14, 1  ;;  %v991_v53 = vmax.f32 %v989_v23, %v990_v12 }
  0xcf   : > { %v995_v8 = vsel %vm180_vm0, %v1703_v51, -inf  ;;  %v996_v24 = vsel %vm180_vm0, %v1707_v2, -inf  ;;  %v997_v57 = vsel %vm180_vm0, %v1709_v56, -inf  ;;  %v998_v13 = vsel %vm180_vm0, %v1711_v9, -inf }
  0xd0   : > { %v1004_v11 = vsel %vm180_vm0, %v1764_v35, -inf  ;;  %v1880_v21 = vmax.f32 %v977_v6, %v978_v37  ;;  %v1882_v40 = vmax.f32 %v984_v14, %v985_v34  ;;  %v992_v12 = vrot.slane %v991_v53, 1 }
  0xd1   : > { %v999_v41 = vmax.f32 %v994_v44, %v998_v13  ;;  %v1001_v3 = vmax.f32 %v996_v24, %v997_v57  ;;  %v1005_v51 = vsel %vm180_vm0, %v1770_v16, -inf  ;;  %v1006_v2 = vsel %vm180_vm0, %v1772_v36, -inf }
  0xd2   : > { %v1007_v56 = vsel %vm180_vm0, %v1774_v10, -inf  ;;  %v1890_v9 = vmax.f32 %v991_v53, %v992_v12  ;;  %v1008_v35 = vsel %vm180_vm0, %v1776_v0, -inf  ;;  %v1014_v39 = vsel %vm180_vm0, %v1828_v33, -inf }
  0xd3   : > { %v1000_v45 = vmax.f32 %v999_v41, %v995_v8  ;;  %v1011_v15 = vmax.f32 %v1006_v2, %v1007_v56  ;;  %v1009_v25 = vmax.f32 %v1004_v11, %v1008_v35  ;;  %v1015_v16 = vsel %vm180_vm0, %v1834_v58, -inf  ;;  %v2062_v2 = vld [vmem:[#allocation12_spill] sm:$0xff]  ;;  %v2063_v56 = vld [vmem:[#allocation13_spill] sm:$0xff] }
  0xd4   : > { %v1016_v36 = vsel %vm180_vm0, %v1836_v7, -inf  ;;  %v1017_v10 = vsel %vm180_vm0, %v1838_v18, -inf  ;;  %v1018_v31 = vsel %vm180_vm0, %v1840_v59, -inf  ;;  %v1024_v0 = vsel %vm180_vm0, %v1720_v42, -inf }
  0xd5   : > { %v1900_v27 = vmax.f32 %v1000_v45, %v1001_v3  ;;  %v1010_v17 = vmax.f32 %v1009_v25, %v1005_v51  ;;  %v1019_v38 = vmax.f32 %v1014_v39, %v1018_v31  ;;  %v1021_v33 = vmax.f32 %v1016_v36, %v1017_v10  ;;  %v2064_v45 = vld [vmem:[#allocation14_spill] sm:$0xff]  ;;  %v2066_v39 = vld [vmem:[#allocation16_spill] sm:$0xff] }
  0xd6   : > { %v1025_v58 = vsel %vm180_vm0, %v1722_v28, -inf  ;;  %v1026_v7 = vsel %vm180_vm0, %v1725_v32, -inf  ;;  %v1027_v18 = vsel %vm180_vm0, %v1730_v62, -inf  ;;  %v1028_v59 = vsel %vm180_vm0, %v1734_v60, -inf  ;;  %v2068_v31 = vld [vmem:[#allocation18_spill] sm:$0xff] }
  0xd7   : > { %v1003_v23 = vmax.f32 %v1900_v27, 0.0  ;;  %v1917_v61 = vmax.f32 %v1010_v17, %v1011_v15  ;;  %v1020_v42 = vmax.f32 %v1019_v38, %v1015_v16  ;;  %v1029_v19 = vmax.f32 %v1024_v0, %v1028_v59  ;;  %v2065_v15 = vld [vmem:[#allocation15_spill] sm:$0xff] }
  0xd8   : > { %v1030_v55 = vsel %vm180_vm0, %v1739_v1, -inf  ;;  %v1033_v28 = vmax.f32 %v1026_v7, %v1027_v18  ;;  %v1036_v6 = vsel %vm180_vm0, %v1784_v43, -inf  ;;  %v1037_v32 = vsel %vm180_vm0, %v1786_v48, -inf  ;;  %v2069_v17 = vld [vmem:[#allocation19_spill] sm:$0xff] }
  0xd9   : > { %v1031_v4 = vmax.f32 %v1025_v58, %v1030_v55  ;;  %v1013_v62 = vmax.f32 %v1917_v61, 0.0  ;;  %v1926_v14 = vmax.f32 %v1020_v42, %v1021_v33  ;;  %v1038_v60 = vsel %vm180_vm0, %v1789_v63, -inf  ;;  %v2070_v58 = vld [vmem:[#allocation20_spill] sm:$0xff] }
  0xda   : > { %v1039_v44 = vsel %vm180_vm0, %v1795_v20, -inf  ;;  %v1040_v1 = vsel %vm180_vm0, %v1802_v47, -inf  ;;  %v1042_v43 = vsel %vm180_vm0, %v1804_v49, -inf  ;;  %v1047_v24 = vsel %vm180_vm0, %v1848_v54, -inf }
  0xdb   : > { %v1032_v37 = vmax.f32 %v1029_v19, %v1031_v4  ;;  %v1045_v34 = vmax.f32 %v1038_v60, %v1039_v44  ;;  %v1023_v48 = vmax.f32 %v1926_v14, 0.0  ;;  %v1041_v53 = vmax.f32 %v1036_v6, %v1040_v1  ;;  %v2071_v1 = vld [vmem:[#allocation2_spill] sm:$0xff] }
  0xdc   : > { %v1043_v8 = vmax.f32 %v1037_v32, %v1042_v43  ;;  %v1048_v63 = vsel %vm180_vm0, %v1850_v22, -inf  ;;  %v1049_v20 = vsel %vm180_vm0, %v1853_v29, -inf  ;;  %v1050_v47 = vsel %vm180_vm0, %v1858_v30, -inf  ;;  %v2072_v43 = vld [vmem:[#allocation3_spill] sm:$0xff] }
  0xdd   : > { %v1034_v57 = vmax.f32 %v1032_v37, %v1033_v28  ;;  %v1051_v49 = vsel %vm180_vm0, %v1862_v52, -inf  ;;  %v1053_v11 = vsel %vm180_vm0, %v1864_v26, -inf  ;;  %v1056_v12 = vmax.f32 %v1049_v20, %v1050_v47 }
  0xde   : > { %v1044_v13 = vmax.f32 %v1041_v53, %v1043_v8  ;;  %v1052_v54 = vmax.f32 %v1047_v24, %v1051_v49  ;;  %v1054_v3 = vmax.f32 %v1048_v63, %v1053_v11  ;;  %v1059_v22 = vsel %vm180_vm0, %v1741_v5, -inf  ;;  %v2067_v5 = vld [vmem:[#allocation17_spill] sm:$0xff]  ;;  %v2074_v53 = vld [vmem:[#allocation4_spill] sm:$0xff]  ;;  %v2078_v63 = vld [vmem:[#allocation7_spill] sm:$0xff] }
  0xdf   : > { %v1035_v41 = vmax.f32 %v1034_v57, 0.0  ;;  %v1060_v29 = vsel %vm180_vm0, %v2062_v2, -inf  ;;  %v1061_v30 = vsel %vm180_vm0, %v2063_v56, -inf  ;;  %v1062_v52 = vsel %vm180_vm0, %v2064_v45, -inf  ;;  %v2077_v57 = vld [vmem:[#allocation6_spill] sm:$0xff]  ;;  %v2081_v49 = vld [vmem:[#allocation9_spill] sm:$0xff] }
  0xe0   : > { %v1046_v51 = vmax.f32 %v1044_v13, %v1045_v34  ;;  %v1055_v35 = vmax.f32 %v1052_v54, %v1054_v3  ;;  %v1063_v26 = vsel %vm180_vm0, %v2065_v15, -inf  ;;  %v1066_v25 = vmax.f32 %v1061_v30, %v1062_v52  ;;  %v2080_v13 = vld [vmem:[#allocation8_spill] sm:$0xff]  ;;  %v2084_v2 = vld [vmem:[#allocation11_spill] sm:$0xff] }
  0xe1   : > { %v1069_v16 = vsel %vm180_vm0, %v2066_v39, -inf  ;;  %v1064_v36 = vmax.f32 %v1059_v22, %v1063_v26  ;;  %v1070_v10 = vsel %vm180_vm0, %v2067_v5, -inf  ;;  %v1071_v0 = vsel %vm180_vm0, %v2068_v31, -inf  ;;  %v2083_v22 = vld [vmem:[#allocation10_spill] sm:$0xff] }
  0xe2   : > { %v1072_v38 = vsel %vm180_vm0, %v2069_v17, -inf  ;;  %v1057_v33 = vmax.f32 %v1055_v35, %v1056_v12  ;;  %v1073_v7 = vsel %vm180_vm0, %v2070_v58, -inf  ;;  %v1079_v59 = vsel %vm180_vm0, %v1866_v50, -inf }
  0xe3   : > { %v1076_v18 = vmax.f32 %v1071_v0, %v1072_v38  ;;  %v1065_v42 = vmax.f32 %v1064_v36, %v1060_v29  ;;  %v1074_v19 = vmax.f32 %v1069_v16, %v1073_v7  ;;  %v1080_v55 = vsel %vm180_vm0, %v1868_v46, -inf  ;;  %v2075_v46 = vld [vmem:[#allocation5_spill] sm:$0xff] }
  0xe4   : > { %v1081_v4 = vsel %vm180_vm0, %v1880_v21, -inf  ;;  %v1058_v28 = vmax.f32 %v1057_v33, 0.0  ;;  %v1082_v6 = vsel %vm180_vm0, %v1882_v40, -inf  ;;  %v1083_v32 = vsel %vm180_vm0, %v1890_v9, -inf }
  0xe5   : > { %v1067_v60 = vmax.f32 %v1065_v42, %v1066_v25  ;;  %v1075_v44 = vmax.f32 %v1074_v19, %v1070_v10  ;;  %v1084_v50 = vmax.f32 %v1079_v59, %v1083_v32  ;;  %v1086_v37 = vmax.f32 %v1081_v4, %v1082_v6 }
  0xe6   : > { %v2073_v34 = vmax.f32 %v2071_v1, %v2072_v43  ;;  %v2076_v8 = vmax.f32 %v2074_v53, %v2075_v46  ;;  %v2079_v20 = vmax.f32 %v2077_v57, %v2078_v63  ;;  %v2082_v11 = vmax.f32 %v2080_v13, %v2081_v49 }
  0xe7   : > { %v1068_v40 = vmax.f32 %v1067_v60, 0.0  ;;  %v1077_v24 = vmax.f32 %v1075_v44, %v1076_v18  ;;  %v1085_v9 = vmax.f32 %v1084_v50, %v1080_v55  ;;  %v2085_v29 = vmax.f32 %v2083_v22, %v2084_v2 }
  0xe8   : > { %v1090_v21 = vsel %vm1089_vm3, %v2076_v8, %v2073_v34  ;;  %v1103_v30 = vsel %vm1089_vm3, %v1035_v41, %v1046_v51 }
  0xe9   : > { %v1092_v47 = vsel %vm1091_vm4, %v1090_v21, %v2079_v20  ;;  %v1078_v54 = vmax.f32 %v1077_v24, 0.0  ;;  %v1087_v3 = vmax.f32 %v1085_v9, %v1086_v37  ;;  %v1104_v52 = vsel %vm1091_vm4, %v1103_v30, %v1058_v28 }
  0xea   : > { %v1094_v12 = vsel %vm1093_vm5, %v1092_v47, %v2082_v11  ;;  %v1105_v26 = vsel %vm1093_vm5, %v1104_v52, %v1068_v40 }
  0xeb   : > { %v1096_v56 = vsel %vm1095_vm6, %v1094_v12, %v2085_v29  ;;  %v1088_v35 = vmax.f32 %v1087_v3, 0.0  ;;  %v1106_v41 = vsel %vm1095_vm6, %v1105_v26, %v1078_v54 }
  0xec   : > { %v1098_v45 = vsel %vm1097_vm7, %v1096_v56, %v1003_v23 }
  0xed   : > { %v1100_v15 = vsel %vm1099_vm8, %v1098_v45, %v1013_v62  ;;  %v1107_v51 = vsel %vm1097_vm7, %v1106_v41, %v1088_v35 }
  0xee   : > { %v1102_v25 = vsel %vm1101_vm9, %v1100_v15, %v1023_v48  ;;  %1109 = vst.msk [vmem:[%s147_s17 + $0x8] sm:$0x3f] %vm753_vm2, %v1107_v51 }
  0xef   : > { %1108 = vst.msk [vmem:[%s147_s17] sm:$0xff] %vm180_vm0, %v1102_v25 }
  0xf0 PF: > { %s11_s8 = sadd.s32 1, %s1252_s8   ;;  %s2086_s6 = smov %s1248_s7 }
  0xf1   : > { %p8_p5 = scmp.ge.s32.totalorder %s11_s8, 4   ;;  %s2087_s7 = smov %s2089_s9 }
  0xf3   :  { %10 = sbr.rel (!%p8_p5) target bundleno = 2 (0x2), region = 54 }

</bundles_post_ra>
